<compile_context>
chip_gen: v7x
topology: tpu7x:2x2x1
jax: 0.10.0
libtpu: 0.0.40
codegen_flags: <defaults>
</compile_context>

<pallas_src>
import functools

import jax
import jax.numpy as jnp
from jax.experimental import pallas as pl
from jax.experimental.pallas import tpu as pltpu


def _full_down_kernel(x_ref, w_ref, o_ref, *, G, H, W, Cin, Cout):
    """Processes G images per grid step.

    x_ref : (G, H, W, Cin)      f32 NHWC input block
    w_ref : (Cout, 9*Cin)       bf16 conv weights, taps flattened on the K axis
    o_ref : (G, Cout, Hp*Wp)    f32 output block (lane-dense in Hp*Wp)
    """
    Hp, Wp = H // 2, W // 2
    M1 = Hp * Wp

    # ---- per-image: AvgPool2d(2,2) -> zero-pad -> im2col, all as values ------
    cols = []
    for g in range(G):
        xi = x_ref[g]                                       # (H, W, Cin) f32
        xw = xi.reshape(H, Wp, 2, Cin)
        tw = xw[:, :, 0, :] + xw[:, :, 1, :]                # (H, Wp, Cin)
        th = tw.reshape(Hp, 2, Wp, Cin)
        pooled = 0.25 * (th[:, 0, :, :] + th[:, 1, :, :])   # (Hp, Wp, Cin)

        # zero-pad by 1 pixel on H and W (no scratch, no VMEM round trip)
        zrow = jnp.zeros((1, Wp, Cin), jnp.float32)
        ph = jnp.concatenate([zrow, pooled, zrow], axis=0)  # (Hp+2, Wp, Cin)
        zcol = jnp.zeros((Hp + 2, 1, Cin), jnp.float32)
        padded = jnp.concatenate([zcol, ph, zcol], axis=1)  # (Hp+2, Wp+2, Cin)

        taps = [padded[dy:dy + Hp, dx:dx + Wp, :].reshape(M1, Cin)
                for dy in range(3) for dx in range(3)]
        cols.append(jnp.concatenate(taps, axis=-1))         # (M1, 9*Cin)
    col = cols[0] if G == 1 else jnp.concatenate(cols, axis=0)   # (G*M1, 9*Cin)

    # ---- single MXU matmul: bf16 operands, f32 accumulation ------------------
    # w_ref is (Cout, K); contracting col on its K axis ("trans_b") yields the
    # result already channel-major: (Cout, G*M1).
    acc_t = jax.lax.dot_general(
        w_ref[...], col.astype(jnp.bfloat16),
        dimension_numbers=(((1,), (1,)), ((), ())),
        preferred_element_type=jnp.float32)                 # (Cout, G*M1) f32
    # NOTE: conv bias intentionally omitted — exactly cancelled by InstanceNorm.

    # ---- InstanceNorm2d (affine=False, eps=1e-5, biased var) + LeakyReLU -----
    inv_n = 1.0 / float(M1)
    for g in range(G):
        seg = acc_t[:, g * M1:(g + 1) * M1]                 # (Cout, M1) f32
        mean = jnp.sum(seg, axis=1, keepdims=True) * inv_n
        cen = seg - mean
        var = jnp.sum(cen * cen, axis=1, keepdims=True) * inv_n
        y = cen * jax.lax.rsqrt(var + 1e-5)
        y = jnp.where(y > 0, y, 0.2 * y)
        o_ref[g] = y.astype(o_ref.dtype)                    # lane-dense store


def _round_up(x, m):
    return -(-x // m) * m


def _vmem_estimate(G, H, W, Cin, Cout):
    """(8,128)-tile-padding-aware VMEM estimate (bytes) for one grid step."""
    Hp, Wp = H // 2, W // 2
    M1 = Hp * Wp
    # pipeline blocks (last two dims pad to sublane/lane multiples)
    in_blk = G * H * _round_up(W, 8) * _round_up(Cin, 128) * 4          # f32
    out_blk = G * _round_up(Cout, 8) * _round_up(M1, 128) * 4           # f32
    w_blk = _round_up(Cout, 16) * _round_up(9 * Cin, 128) * 2           # bf16
    # large live values inside the kernel (im2col block, padded image, acc)
    col_val = _round_up(G * M1, 16) * _round_up(9 * Cin, 128) * 2       # bf16
    pool_val = G * (Hp + 2) * _round_up(Wp + 2, 8) * _round_up(Cin, 128) * 4
    acc_val = _round_up(Cout, 8) * _round_up(G * M1, 128) * 4
    # in/out/weight blocks are double-buffered by the pipeline
    return 2 * (in_blk + out_blk + w_blk) + col_val + pool_val + acc_val


def full_down_block(x_nchw, w_hwio, bias=None):
    """x_nchw: (B, Cin, H, W) -> (B, Cout, H//2, W//2).

    `bias` (Conv2d bias) is accepted for interface parity but unused: a
    per-channel constant added right before InstanceNorm2d(affine=False)
    cancels exactly.
    """
    del bias
    B, Cin, H, W = x_nchw.shape
    assert H % 2 == 0 and W % 2 == 0, "AvgPool2d(2,2) requires even H and W"
    Cout = w_hwio.shape[-1]
    Hp, Wp = H // 2, W // 2

    x_nhwc = jnp.transpose(x_nchw, (0, 2, 3, 1)).astype(jnp.float32)
    # (3,3,Cin,Cout) -> (9*Cin, Cout) -> (Cout, 9*Cin), bf16 MXU operand.
    w_t = jnp.transpose(
        w_hwio.astype(jnp.float32).reshape(9 * Cin, Cout)).astype(jnp.bfloat16)

    # Generation-conditional VMEM cap (75% of physical, 64 MiB fallback).
    try:
        phys_vmem = int(getattr(pltpu.get_tpu_info(), "vmem_capacity_bytes"))
    except Exception:
        phys_vmem = 64 << 20
    cap = (phys_vmem * 3) // 4

    # Fold G images per grid step: largest divisor of B (<=8) that still keeps
    # >=2 parallel grid steps (v7x megacore) and fits the VMEM cap.
    G = 1
    for g in range(2, min(B, 8) + 1):
        if B % g == 0 and B // g >= 2 and 2 * _vmem_estimate(g, H, W, Cin, Cout) <= cap:
            G = g
    need = _vmem_estimate(G, H, W, Cin, Cout)
    vmem_limit = int(min(max(2 * need, 32 << 20), cap))

    kernel = functools.partial(
        _full_down_kernel, G=G, H=H, W=W, Cin=Cin, Cout=Cout)
    out = pl.pallas_call(
        kernel,
        out_shape=jax.ShapeDtypeStruct((B, Cout, Hp * Wp), jnp.float32),
        grid=(B // G,),
        in_specs=[
            pl.BlockSpec((G, H, W, Cin), lambda b: (b, 0, 0, 0)),
            pl.BlockSpec((Cout, 9 * Cin), lambda b: (0, 0)),
        ],
        out_specs=pl.BlockSpec((G, Cout, Hp * Wp), lambda b: (b, 0, 0)),
        compiler_params=pltpu.CompilerParams(
            dimension_semantics=("parallel",),
            vmem_limit_bytes=vmem_limit),
    )(x_nhwc, w_t)

    # Channel-major output: only a reshape is needed to recover NCHW.
    return out.reshape(B, Cout, Hp, Wp)


def _reference(x_nchw, w_hwio, bias, operand_dtype=jnp.float32):
    """Pure-JAX reference of the PyTorch forward pass (bias included).

    operand_dtype=bf16 mirrors the kernel's MXU operand precision (f32 accum).
    """
    x = jnp.transpose(x_nchw, (0, 2, 3, 1)).astype(jnp.float32)     # NHWC
    B, H, W, C = x.shape
    pooled = x.reshape(B, H // 2, 2, W // 2, 2, C).mean(axis=(2, 4))
    lhs = pooled.astype(operand_dtype).astype(jnp.float32)
    rhs = w_hwio.astype(operand_dtype).astype(jnp.float32)
    y = jax.lax.conv_general_dilated(
        lhs, rhs, window_strides=(1, 1), padding="SAME",
        dimension_numbers=("NHWC", "HWIO", "NHWC")) + bias
    mean = y.mean(axis=(1, 2), keepdims=True)
    var = ((y - mean) ** 2).mean(axis=(1, 2), keepdims=True)
    y = (y - mean) * jax.lax.rsqrt(var + 1e-5)
    y = jnp.where(y > 0, y, 0.2 * y)
    return jnp.transpose(y, (0, 3, 1, 2))                           # NCHW


if __name__ == "__main__":
    key = jax.random.PRNGKey(0)
    k1, k2, k3 = jax.random.split(key, 3)

    B, Cin, H, W = 2, 4, 16, 16
    Cout = 8

    x = jax.random.normal(k1, (B, Cin, H, W), jnp.float32)
    # HWIO conv weights (PyTorch stores OIHW; semantics identical after transpose).
    w = 0.1 * jax.random.normal(k2, (3, 3, Cin, Cout), jnp.float32)
    bias = 0.1 * jax.random.normal(k3, (Cout,), jnp.float32)

    run = jax.jit(full_down_block)
    out = jax.block_until_ready(run(x, w, bias))
    assert out.shape == (B, Cout, H // 2, W // 2), out.shape

    # Tight check vs. a reference that rounds conv operands to bf16 (matches
    # the kernel's MXU operand precision; both accumulate in f32).
    ref_bf16 = _reference(x, w, bias, operand_dtype=jnp.bfloat16)
    err_bf16 = float(jnp.max(jnp.abs(out - ref_bf16)))
    assert err_bf16 < 2e-3, err_bf16

    # Loose check vs. the pure-f32 PyTorch semantics (bf16 operand rounding).
    ref_f32 = _reference(x, w, bias, operand_dtype=jnp.float32)
    err_f32 = float(jnp.max(jnp.abs(out - ref_f32)))
    assert err_f32 < 7.5e-2, err_f32

    print("KERNEL_OK")
</pallas_src>

<mosaic_0001>
module attributes {stable_mosaic.version = 11 : i64} {
  func.func @_full_down_kernel(%arg0: i32, %arg1: memref<1x16x16x4xf32, #tpu.memory_space<vmem>>, %arg2: memref<8x36xbf16, #tpu.memory_space<vmem>>, %arg3: memref<1x8x64xf32, #tpu.memory_space<vmem>>) attributes {dimension_semantics = [#tpu.dimension_semantics<parallel>], iteration_bounds = array<i64: 2>, scalar_prefetch = 0 : i64, scratch_operands = 0 : i64, tpu.core_type = #tpu.core_type<tc>, window_params = [{transform_indices = @transform_0, window_bounds = array<i64: 1, 16, 16, 4>}, {pipeline_mode = #tpu.pipeline_mode<synchronous>, transform_indices = @transform_1, window_bounds = array<i64: 8, 36>}, {transform_indices = @transform_2, window_bounds = array<i64: 1, 8, 64>}]} {
    %c0 = arith.constant 0 : index
    %c0_0 = arith.constant 0 : index
    %c0_1 = arith.constant 0 : index
    %c0_2 = arith.constant 0 : index
    %0 = vector.load %arg1[%c0, %c0_0, %c0_1, %c0_2] : memref<1x16x16x4xf32, #tpu.memory_space<vmem>>, vector<1x16x16x4xf32>
    %1 = vector.shape_cast %0 : vector<1x16x16x4xf32> to vector<16x16x4xf32>
    %2 = vector.shape_cast %1 : vector<16x16x4xf32> to vector<16x8x2x4xf32>
    %3 = vector.extract_strided_slice %2 {offsets = [0, 0, 0, 0], sizes = [16, 8, 1, 4], strides = [1, 1, 1, 1]} : vector<16x8x2x4xf32> to vector<16x8x1x4xf32>
    %4 = vector.shape_cast %3 : vector<16x8x1x4xf32> to vector<16x8x4xf32>
    %5 = vector.extract_strided_slice %2 {offsets = [0, 0, 1, 0], sizes = [16, 8, 1, 4], strides = [1, 1, 1, 1]} : vector<16x8x2x4xf32> to vector<16x8x1x4xf32>
    %6 = vector.shape_cast %5 : vector<16x8x1x4xf32> to vector<16x8x4xf32>
    %7 = arith.addf %4, %6 : vector<16x8x4xf32>
    %8 = vector.shape_cast %7 : vector<16x8x4xf32> to vector<8x2x8x4xf32>
    %9 = vector.extract_strided_slice %8 {offsets = [0, 0, 0, 0], sizes = [8, 1, 8, 4], strides = [1, 1, 1, 1]} : vector<8x2x8x4xf32> to vector<8x1x8x4xf32>
    %10 = vector.shape_cast %9 : vector<8x1x8x4xf32> to vector<8x8x4xf32>
    %11 = vector.extract_strided_slice %8 {offsets = [0, 1, 0, 0], sizes = [8, 1, 8, 4], strides = [1, 1, 1, 1]} : vector<8x2x8x4xf32> to vector<8x1x8x4xf32>
    %12 = vector.shape_cast %11 : vector<8x1x8x4xf32> to vector<8x8x4xf32>
    %13 = arith.addf %10, %12 : vector<8x8x4xf32>
    %cst = arith.constant 2.500000e-01 : f32
    %14 = vector.broadcast %cst : f32 to vector<8x8x4xf32>
    %15 = arith.mulf %14, %13 : vector<8x8x4xf32>
    %cst_3 = arith.constant 0.000000e+00 : f32
    %16 = vector.broadcast %cst_3 : f32 to vector<1x8x4xf32>
    %17 = tpu.concatenate %16, %15, %16 in 0 : vector<1x8x4xf32>, vector<8x8x4xf32>, vector<1x8x4xf32> -> vector<10x8x4xf32>
    %cst_4 = arith.constant 0.000000e+00 : f32
    %18 = vector.broadcast %cst_4 : f32 to vector<10x1x4xf32>
    %19 = tpu.concatenate %18, %17, %18 in 1 : vector<10x1x4xf32>, vector<10x8x4xf32>, vector<10x1x4xf32> -> vector<10x10x4xf32>
    %20 = vector.extract_strided_slice %19 {offsets = [0, 0, 0], sizes = [8, 8, 4], strides = [1, 1, 1]} : vector<10x10x4xf32> to vector<8x8x4xf32>
    %21 = vector.shape_cast %20 : vector<8x8x4xf32> to vector<64x4xf32>
    %22 = vector.extract_strided_slice %19 {offsets = [0, 1, 0], sizes = [8, 8, 4], strides = [1, 1, 1]} : vector<10x10x4xf32> to vector<8x8x4xf32>
    %23 = vector.shape_cast %22 : vector<8x8x4xf32> to vector<64x4xf32>
    %24 = vector.extract_strided_slice %19 {offsets = [0, 2, 0], sizes = [8, 8, 4], strides = [1, 1, 1]} : vector<10x10x4xf32> to vector<8x8x4xf32>
    %25 = vector.shape_cast %24 : vector<8x8x4xf32> to vector<64x4xf32>
    %26 = vector.extract_strided_slice %19 {offsets = [1, 0, 0], sizes = [8, 8, 4], strides = [1, 1, 1]} : vector<10x10x4xf32> to vector<8x8x4xf32>
    %27 = vector.shape_cast %26 : vector<8x8x4xf32> to vector<64x4xf32>
    %28 = vector.extract_strided_slice %19 {offsets = [1, 1, 0], sizes = [8, 8, 4], strides = [1, 1, 1]} : vector<10x10x4xf32> to vector<8x8x4xf32>
    %29 = vector.shape_cast %28 : vector<8x8x4xf32> to vector<64x4xf32>
    %30 = vector.extract_strided_slice %19 {offsets = [1, 2, 0], sizes = [8, 8, 4], strides = [1, 1, 1]} : vector<10x10x4xf32> to vector<8x8x4xf32>
    %31 = vector.shape_cast %30 : vector<8x8x4xf32> to vector<64x4xf32>
    %32 = vector.extract_strided_slice %19 {offsets = [2, 0, 0], sizes = [8, 8, 4], strides = [1, 1, 1]} : vector<10x10x4xf32> to vector<8x8x4xf32>
    %33 = vector.shape_cast %32 : vector<8x8x4xf32> to vector<64x4xf32>
    %34 = vector.extract_strided_slice %19 {offsets = [2, 1, 0], sizes = [8, 8, 4], strides = [1, 1, 1]} : vector<10x10x4xf32> to vector<8x8x4xf32>
    %35 = vector.shape_cast %34 : vector<8x8x4xf32> to vector<64x4xf32>
    %36 = vector.extract_strided_slice %19 {offsets = [2, 2, 0], sizes = [8, 8, 4], strides = [1, 1, 1]} : vector<10x10x4xf32> to vector<8x8x4xf32>
    %37 = vector.shape_cast %36 : vector<8x8x4xf32> to vector<64x4xf32>
    %38 = tpu.concatenate %21, %23, %25, %27, %29, %31, %33, %35, %37 in 1 : vector<64x4xf32>, vector<64x4xf32>, vector<64x4xf32>, vector<64x4xf32>, vector<64x4xf32>, vector<64x4xf32>, vector<64x4xf32>, vector<64x4xf32>, vector<64x4xf32> -> vector<64x36xf32>
    %c0_5 = arith.constant 0 : index
    %c0_6 = arith.constant 0 : index
    %39 = vector.load %arg2[%c0_5, %c0_6] : memref<8x36xbf16, #tpu.memory_space<vmem>>, vector<8x36xbf16>
    %40 = arith.truncf %38 : vector<64x36xf32> to vector<64x36xbf16>
    %cst_7 = arith.constant dense<0.000000e+00> : vector<8x64xf32>
    %41 = tpu.matmul %39, %40, %cst_7 {dimension_numbers = #tpu.dot_dimension_numbers<[1], [1], [0], [0], [0, 0, 1, 0], [], []>} : vector<8x36xbf16>, vector<64x36xbf16>, vector<8x64xf32> -> vector<8x64xf32>
    %cst_8 = arith.constant dense<0.000000e+00> : vector<8xf32>
    %42 = vector.multi_reduction <add>, %41, %cst_8 [1] : vector<8x64xf32> to vector<8xf32>
    %43 = vector.shape_cast %42 : vector<8xf32> to vector<8x1xf32>
    %cst_9 = arith.constant 1.562500e-02 : f32
    %44 = vector.broadcast %cst_9 : f32 to vector<8x1xf32>
    %45 = arith.mulf %43, %44 : vector<8x1xf32>
    %46 = vector.broadcast %45 : vector<8x1xf32> to vector<8x64xf32>
    %47 = arith.subf %41, %46 : vector<8x64xf32>
    %48 = arith.mulf %47, %47 : vector<8x64xf32>
    %cst_10 = arith.constant dense<0.000000e+00> : vector<8xf32>
    %49 = vector.multi_reduction <add>, %48, %cst_10 [1] : vector<8x64xf32> to vector<8xf32>
    %50 = vector.shape_cast %49 : vector<8xf32> to vector<8x1xf32>
    %cst_11 = arith.constant 1.562500e-02 : f32
    %51 = vector.broadcast %cst_11 : f32 to vector<8x1xf32>
    %52 = arith.mulf %50, %51 : vector<8x1xf32>
    %cst_12 = arith.constant 9.99999974E-6 : f32
    %53 = vector.broadcast %cst_12 : f32 to vector<8x1xf32>
    %54 = arith.addf %52, %53 : vector<8x1xf32>
    %55 = math.rsqrt %54 : vector<8x1xf32>
    %56 = vector.broadcast %55 : vector<8x1xf32> to vector<8x64xf32>
    %57 = arith.mulf %47, %56 : vector<8x64xf32>
    %cst_13 = arith.constant 0.000000e+00 : f32
    %58 = vector.broadcast %cst_13 : f32 to vector<8x64xf32>
    %59 = arith.cmpf ogt, %57, %58 : vector<8x64xf32>
    %cst_14 = arith.constant 2.000000e-01 : f32
    %60 = vector.broadcast %cst_14 : f32 to vector<8x64xf32>
    %61 = arith.mulf %60, %57 : vector<8x64xf32>
    %62 = arith.select %59, %57, %61 : vector<8x64xi1>, vector<8x64xf32>
    %c0_15 = arith.constant 0 : index
    %c0_16 = arith.constant 0 : index
    %c0_17 = arith.constant 0 : index
    %63 = vector.load %arg3[%c0_15, %c0_16, %c0_17] : memref<1x8x64xf32, #tpu.memory_space<vmem>>, vector<1x8x64xf32>
    %64 = vector.shape_cast %63 : vector<1x8x64xf32> to vector<8x64xf32>
    %65 = vector.shape_cast %62 : vector<8x64xf32> to vector<1x8x64xf32>
    tpu.vector_store %arg3[%c0_15, %c0_16, %c0_17], %65 {strides = array<i32>} : memref<1x8x64xf32, #tpu.memory_space<vmem>>, vector<1x8x64xf32>,
    return
  }
  func.func @transform_0(%arg0: i32) -> (i32, i32, i32, i32) {
    %c0_i32 = arith.constant 0 : i32
    %c0_i32_0 = arith.constant 0 : i32
    %c0_i32_1 = arith.constant 0 : i32
    %c0_i32_2 = arith.constant 0 : i32
    return %arg0, %c0_i32, %c0_i32_0, %c0_i32_1 : i32, i32, i32, i32
  }
  func.func @transform_1(%arg0: i32) -> (i32, i32) {
    %c0_i32 = arith.constant 0 : i32
    %c0_i32_0 = arith.constant 0 : i32
    %c0_i32_1 = arith.constant 0 : i32
    return %c0_i32, %c0_i32_0 : i32, i32
  }
  func.func @transform_2(%arg0: i32) -> (i32, i32, i32) {
    %c0_i32 = arith.constant 0 : i32
    %c0_i32_0 = arith.constant 0 : i32
    %c0_i32_1 = arith.constant 0 : i32
    return %arg0, %c0_i32, %c0_i32_0 : i32, i32, i32
  }
}

</mosaic_0001>

<bundles_post_ra>
// kernel: full_down_block.1
= control target key start
LH: loop header
LB: loop body
LE: loop exit
PB: predicated region body
PF: predicated region fallthrough
CT: control target
= control target key end

     0   :  { %s2814_s9 = smov 0   ;;  %s3632_s0 = inlined_call_operand.vmem [shape: f32[2,16,16,4], index: 0, kind: input, shape index: {}]   ;;  %s3633_s1 = inlined_call_operand.vmem [shape: bf16[8,36], index: 1, kind: input, shape index: {}]   ;;  %s3634_s2 = inlined_call_operand.vmem [shape: f32[2,8,64], index: 2, kind: output, shape index: {}]  }
   0x1 LB: > { %s2410_s10 = sadd.s32 4294967295, %s2786_s9   ;;  %p2414_p0 = scmp.ge.s32.totalorder %s2786_s9, 1  ;;  %s2786_s9 = sphi %s2814_s9, %s12_s9  }
   0x2   : > { %p112_p1 = scmp.lt.s32.totalorder %s2786_s9, 3 }
   0x4   : > { %p113_p2 = pnand %p2414_p0, %p112_p1 }
   0x6   : > { %116 = sbr.rel (%p113_p2) target bundleno = 882 (0x372), region = 28 }
   0xd   : > { %p133_p3 = scmp.lt.s32.totalorder %s2410_s10, 1  ;;  %v211_v0 = vlaneseq  ;;  %v2788_v1 = vmov 1983009808   ;;  %vm1921_vm0 = vcmask 1040384   ;;  %v3635_v5 = vmov 0.0   ;;  %s2790_s15 = smov 12  }
   0xe   : > { %v209_v2 = vunpack.c.l.s4 %v2788_v1  ;;  %v1903_v6 = vrot.slane %v3635_v5, 7  ;;  %2555 = vmatprep.subr.bf16.mxu0 %v3635_v5  ;;  %vm1839_vm1 = vcmask 1041409   ;;  %vm1841_vm2 = vcmask 1042434   ;;  %s2791_s16 = smov 4   ;;  %s2792_s17 = smov 24  }
   0xf   : > { %s3737_s10 = smov (!%p133_p3, %s2410_s10), 1  ;;  %v212_v3 = vshrl.u32 %v211_v0, 7  ;;  %vm1843_vm3 = vcmask 1043459   ;;  %vm1845_vm4 = vcmask 1044484   ;;  %vm1847_vm5 = vcmask 1045509   ;;  %s2793_s18 = smov 8  }
  0x10   : > { %v210_v4 = vunpack.c.0.s8 %v209_v2  ;;  %s2549_s11 = sshll.u32 %s3737_s10, 8  ;;  %v2840_v12 = vsel %vm1921_vm0, 0.0, %v1903_v6  ;;  %v2843_v13 = vsel %vm1921_vm0, %v1903_v6, 0.0  ;;  %vm1849_vm6 = vcmask 1046534   ;;  %s2794_s19 = smov 20  }
  0x11   : > { %s2830_s14 = scalar_lea.vmem %s3632_s0, %s2549_s11  ;;  %v2837_v11 = vsub.s32 0, %v212_v3  ;;  %3675 = vst [vmem:[#allocation4_spill] sm:$0xff] %v2840_v12  ;;  %3676 = vst [vmem:[#allocation5_spill] sm:$0xff] %v2843_v13  ;;  %vm1851_vm7 = vcmask 1047559   ;;  %vm1956_vm8 = vcmask 1046528   ;;  %vm1981_vm9 = vcmask 1045504  }
  0x12   : > { %v2832_v7 = vsub.s32 %v210_v4, %v212_v3  ;;  %v151_v8 = vld [vmem:[%s2830_s14 + $0x40] sm:$0xff]  ;;  %v152_v9 = vld [vmem:[%s2830_s14 + $0x48] sm:$0xff]  ;;  %v153_v10 = vld [vmem:[%s2830_s14 + $0x50] sm:$0xff]  ;;  %s2795_s20 = smov 28   ;;  %s2796_s21 = smov 16   ;;  %vm2798_vm10 = vmmov 0  }
  0x13   : > { %3674 = vst [vmem:[#allocation3_spill] sm:$0xff] %v2837_v11  ;;  %v154_v14 = vld [vmem:[%s2830_s14 + $0x58] sm:$0xff]  ;;  %v343_v15 = vcombine.high %v151_v8, %v151_v8  ;;  %v360_v17 = vcombine.high %v152_v9, %v152_v9  ;;  %v155_v19 = vld [vmem:[%s2830_s14 + $0x60] sm:$0xff]  ;;  %v377_v20 = vcombine.high %v153_v10, %v153_v10  ;;  %v156_v24 = vld [vmem:[%s2830_s14 + $0x68] sm:$0xff]  ;;  %s2797_s22 = smov 32   ;;  %vm2206_vm11 = vcmask 31744  }
  0x14   : > { %3673 = vst [vmem:[#allocation2_spill] sm:$0xff] %v2832_v7  ;;  %v2847_v16 = vrot.slane %v151_v8, %v2832_v7  ;;  %v2850_v18 = vrot.slane %v152_v9, %v2832_v7  ;;  %v2854_v21 = vrot.slane %v153_v10, %v2832_v7  ;;  %v394_v22 = vcombine.high %v154_v14, %v154_v14  ;;  %v157_v29 = vld [vmem:[%s2830_s14 + $0x70] sm:$0xff]  ;;  %v158_v34 = vld [vmem:[%s2830_s14 + $0x78] sm:$0xff]  ;;  %s2417_s25 = sshll.u32 %s3737_s10, 3 }
  0x15   : > { %v2857_v23 = vrot.slane %v154_v14, %v2832_v7  ;;  %v2861_v25 = vrot.slane %v343_v15, %v2832_v7  ;;  %v2868_v27 = vrot.slane %v360_v17, %v2832_v7  ;;  %v2876_v30 = vrot.slane %v377_v20, %v2832_v7  ;;  %s141_s28 = scalar_lea.vmem %s3634_s2, %s2417_s25 }
  0x16   : > { %v2865_v26 = vcombine.high %v2847_v16, %v2847_v16  ;;  %v2872_v28 = vcombine.high %v2850_v18, %v2850_v18  ;;  %v2880_v31 = vcombine.high %v2854_v21, %v2854_v21  ;;  %v2883_v32 = vrot.slane %v394_v22, %v2832_v7 }
  0x17   : > { %v2887_v33 = vcombine.high %v2857_v23, %v2857_v23  ;;  %v359_v35 = vcombine.high %v2861_v25, %v2861_v25  ;;  %v376_v36 = vcombine.high %v2868_v27, %v2868_v27  ;;  %v411_v37 = vcombine.high %v155_v19, %v155_v19 }
  0x18   : > { %v2895_v38 = vrot.slane %v155_v19, %v2832_v7  ;;  %v2899_v39 = vcombine.high %v2876_v30, %v2876_v30  ;;  %v2903_v40 = vcombine.high %v2883_v32, %v2883_v32  ;;  %v428_v41 = vcombine.high %v156_v24, %v156_v24 }
  0x19   : > { %v2906_v42 = vrot.slane %v156_v24, %v2832_v7  ;;  %v2909_v43 = vrot.slane %v411_v37, %v2832_v7  ;;  %v445_v45 = vcombine.high %v157_v29, %v157_v29  ;;  %v2916_v46 = vrot.slane %v157_v29, %v2832_v7 }
  0x1a   : > { %v2913_v44 = vcombine.high %v2895_v38, %v2895_v38  ;;  %v2919_v47 = vrot.slane %v428_v41, %v2832_v7  ;;  %v462_v49 = vcombine.high %v158_v34, %v158_v34  ;;  %v2926_v50 = vrot.slane %v158_v34, %v2832_v7 }
  0x1b   : > { %3677 = vst [vmem:[#allocation6_spill] sm:$0xff] %v2906_v42  ;;  %3678 = vst [vmem:[#allocation7_spill] sm:$0xff] %v2909_v43  ;;  %v2923_v48 = vcombine.high %v2906_v42, %v2906_v42  ;;  %v427_v51 = vcombine.high %v2909_v43, %v2909_v43  ;;  %v2931_v52 = vrot.slane %v445_v45, %v2832_v7  ;;  %v2450_v54 = vrot.slane %v2847_v16, 9 }
  0x1c   : > { %3679 = vst [vmem:[#allocation8_spill] sm:$0xff] %v2913_v44  ;;  %3680 = vst [vmem:[#allocation9_spill] sm:$0xff] %v2916_v46  ;;  %v2935_v53 = vcombine.high %v2916_v46, %v2916_v46  ;;  %v444_v55 = vcombine.high %v2919_v47, %v2919_v47  ;;  %v2941_v56 = vrot.slane %v462_v49, %v2832_v7  ;;  %v2451_v58 = vrot.slane %v2865_v26, 9 }
  0x1d   : > { %3681 = vst [vmem:[#allocation10_spill] sm:$0xff] %v2919_v47  ;;  %3682 = vst [vmem:[#allocation11_spill] sm:$0xff] %v2923_v48  ;;  %v2945_v57 = vcombine.high %v2926_v50, %v2926_v50  ;;  %v461_v59 = vcombine.high %v2931_v52, %v2931_v52  ;;  %v2452_v60 = vrot.slane %v2861_v25, 9  ;;  %v2453_v61 = vrot.slane %v359_v35, 9 }
  0x1e   : > { %3683 = vst [vmem:[#allocation12_spill] sm:$0xff] %v2926_v50  ;;  %3684 = vst [vmem:[#allocation13_spill] sm:$0xff] %v2931_v52  ;;  %v2454_v62 = vrot.slane %v2850_v18, 9  ;;  %v478_v63 = vcombine.high %v2941_v56, %v2941_v56  ;;  %v2455_v0 = vrot.slane %v2872_v28, 9  ;;  %v2456_v1 = vrot.slane %v2868_v27, 9 }
  0x1f   : > { %3685 = vst [vmem:[#allocation14_spill] sm:$0xff] %v2935_v53  ;;  %3686 = vst [vmem:[#allocation15_spill] sm:$0xff] %v2941_v56  ;;  %v2457_v2 = vrot.slane %v376_v36, 9  ;;  %v2458_v3 = vrot.slane %v2854_v21, 9  ;;  %v2459_v4 = vrot.slane %v2880_v31, 9  ;;  %v2460_v6 = vrot.slane %v2876_v30, 9 }
  0x20   : > { %3687 = vst [vmem:[#allocation16_spill] sm:$0xff] %v2945_v57  ;;  %v2461_v8 = vrot.slane %v2899_v39, 9  ;;  %v2462_v9 = vrot.slane %v2857_v23, 9  ;;  %v2463_v10 = vrot.slane %v2887_v33, 9  ;;  %v2464_v14 = vrot.slane %v2883_v32, 9 }
  0x21   : > { %v2465_v15 = vrot.slane %v2903_v40, 9  ;;  %v2466_v17 = vrot.slane %v2895_v38, 9  ;;  %v2467_v19 = vrot.slane %v2913_v44, 9  ;;  %v2468_v20 = vrot.slane %v2909_v43, 9 }
  0x22   : > { %v2469_v22 = vrot.slane %v427_v51, 9  ;;  %v2470_v24 = vrot.slane %v2906_v42, 9  ;;  %v2471_v29 = vrot.slane %v2923_v48, 9  ;;  %v2472_v34 = vrot.slane %v2919_v47, 9 }
  0x23   : > { %v2473_v37 = vrot.slane %v444_v55, 9  ;;  %v2474_v41 = vrot.slane %v2916_v46, 9  ;;  %v2475_v45 = vrot.slane %v2935_v53, 9  ;;  %v2476_v49 = vrot.slane %v2931_v52, 9 }
  0x24   : > { %v2477_v5 = vrot.slane %v461_v59, 9  ;;  %v2478_v13 = vrot.slane %v2926_v50, 9  ;;  %v2479_v12 = vrot.slane %v2945_v57, 9  ;;  %v2480_v7 = vrot.slane %v2941_v56, 9 }
  0x25   : > { %v2481_v11 = vrot.slane %v478_v63, 9  ;;  %v1295_v42 = vadd.f32 %v2450_v54, %v2847_v16  ;;  %v1296_v48 = vadd.f32 %v2451_v58, %v2865_v26  ;;  %v1297_v47 = vadd.f32 %v2452_v60, %v2861_v25  ;;  %v3689_v54 = vld [vmem:[#allocation7_spill] sm:$0xff] }
  0x26   : > { %v1298_v43 = vadd.f32 %v2453_v61, %v359_v35  ;;  %v1299_v46 = vadd.f32 %v2454_v62, %v2850_v18  ;;  %v1300_v53 = vadd.f32 %v2455_v0, %v2872_v28  ;;  %v1301_v52 = vadd.f32 %v2456_v1, %v2868_v27  ;;  %v3688_v27 = vld [vmem:[#allocation8_spill] sm:$0xff]  ;;  %v3693_v0 = vld [vmem:[#allocation9_spill] sm:$0xff]  ;;  %v3694_v1 = vld [vmem:[#allocation14_spill] sm:$0xff] }
  0x27   : > { %v1302_v44 = vadd.f32 %v2457_v2, %v376_v36  ;;  %v1303_v50 = vadd.f32 %v2458_v3, %v2854_v21  ;;  %v1304_v57 = vadd.f32 %v2459_v4, %v2880_v31  ;;  %v1305_v56 = vadd.f32 %v2460_v6, %v2876_v30  ;;  %v3690_v31 = vld [vmem:[#allocation6_spill] sm:$0xff]  ;;  %v3691_v30 = vld [vmem:[#allocation11_spill] sm:$0xff]  ;;  %v3695_v2 = vld [vmem:[#allocation13_spill] sm:$0xff] }
  0x28   : > { %v1306_v16 = vadd.f32 %v2461_v8, %v2899_v39  ;;  %v1307_v26 = vadd.f32 %v2462_v9, %v2857_v23  ;;  %v1308_v25 = vadd.f32 %v2463_v10, %v2887_v33  ;;  %v1309_v35 = vadd.f32 %v2464_v14, %v2883_v32  ;;  %v3692_v39 = vld [vmem:[#allocation10_spill] sm:$0xff]  ;;  %v3697_v6 = vld [vmem:[#allocation16_spill] sm:$0xff]  ;;  %v3698_v9 = vld [vmem:[#allocation15_spill] sm:$0xff] }
  0x29   : > { %v1310_v18 = vadd.f32 %v2465_v15, %v2903_v40  ;;  %v1311_v28 = vadd.f32 %v2466_v17, %v2895_v38  ;;  %v1312_v36 = vadd.f32 %v2467_v19, %v3688_v27  ;;  %v1313_v21 = vadd.f32 %v2468_v20, %v3689_v54  ;;  %v3696_v38 = vld [vmem:[#allocation12_spill] sm:$0xff] }
  0x2a   : > { %v1314_v58 = vadd.f32 %v2469_v22, %v427_v51  ;;  %v1315_v60 = vadd.f32 %v2470_v24, %v3690_v31  ;;  %v1316_v61 = vadd.f32 %v2471_v29, %v3691_v30  ;;  %v1317_v62 = vadd.f32 %v2472_v34, %v3692_v39 }
  0x2b   : > { %v1318_v23 = vadd.f32 %v2473_v37, %v444_v55  ;;  %v1319_v33 = vadd.f32 %v2474_v41, %v3693_v0  ;;  %v1320_v32 = vadd.f32 %v2475_v45, %v3694_v1  ;;  %v1321_v40 = vadd.f32 %v2476_v49, %v3695_v2  ;;  %v3700_v2 = vld [vmem:[#allocation2_spill] sm:$0xff] }
  0x2c   : > { %v1322_v3 = vadd.f32 %v2477_v5, %v461_v59  ;;  %v1323_v4 = vadd.f32 %v2478_v13, %v3696_v38  ;;  %v1324_v8 = vadd.f32 %v2479_v12, %v3697_v6  ;;  %v1325_v51 = vadd.f32 %v2480_v7, %v3698_v9 }
  0x2d   : > { %v1326_v10 = vadd.f32 %v2481_v11, %v478_v63  ;;  %v1407_v14 = vadd.f32 %v1303_v50, %v1295_v42  ;;  %v1408_v15 = vadd.f32 %v1304_v57, %v1296_v48  ;;  %v1409_v17 = vadd.f32 %v1305_v56, %v1297_v47 }
  0x2e   : > { %v1410_v19 = vadd.f32 %v1306_v16, %v1298_v43  ;;  %v1411_v20 = vadd.f32 %v1307_v26, %v1299_v46  ;;  %v1412_v55 = vadd.f32 %v1308_v25, %v1300_v53  ;;  %v1413_v22 = vadd.f32 %v1309_v35, %v1301_v52  ;;  %v3699_v16 = vld [vmem:[#allocation3_spill] sm:$0xff] }
  0x2f   : > { %v1414_v24 = vadd.f32 %v1310_v18, %v1302_v44  ;;  %v1415_v29 = vadd.f32 %v1319_v33, %v1311_v28  ;;  %v1416_v34 = vadd.f32 %v1320_v32, %v1312_v36  ;;  %v1417_v37 = vadd.f32 %v1321_v40, %v1313_v21  ;;  %v143_v21 = vld [vmem:[%s2830_s14] sm:$0xff] }
  0x30   : > { %v1418_v5 = vadd.f32 %v1322_v3, %v1314_v58  ;;  %v1419_v13 = vadd.f32 %v1323_v4, %v1315_v60  ;;  %v1420_v59 = vadd.f32 %v1324_v8, %v1316_v61  ;;  %v1421_v12 = vadd.f32 %v1325_v51, %v1317_v62  ;;  %v144_v61 = vld [vmem:[%s2830_s14 + $0x8] sm:$0xff]  ;;  %v145_v4 = vld [vmem:[%s2830_s14 + $0x10] sm:$0xff] }
  0x31   : > { %v1422_v41 = vadd.f32 %v1326_v10, %v1318_v23  ;;  %v1471_v7 = vmul.f32 0.25, %v1407_v14  ;;  %v1472_v11 = vmul.f32 0.25, %v1408_v15  ;;  %v1473_v42 = vmul.f32 0.25, %v1409_v17 }
  0x32   : > { %v1474_v47 = vmul.f32 0.25, %v1410_v19  ;;  %v1475_v43 = vmul.f32 0.25, %v1411_v20  ;;  %v1476_v46 = vmul.f32 0.25, %v1412_v55  ;;  %v1477_v48 = vmul.f32 0.25, %v1413_v22  ;;  %v146_v19 = vld [vmem:[%s2830_s14 + $0x18] sm:$0xff] }
  0x33   : > { %v1478_v44 = vmul.f32 0.25, %v1414_v24  ;;  %v1479_v50 = vmul.f32 0.25, %v1415_v29  ;;  %v1480_v52 = vmul.f32 0.25, %v1416_v34  ;;  %v1481_v53 = vmul.f32 0.25, %v1417_v37 }
  0x34   : > { %v1482_v56 = vmul.f32 0.25, %v1418_v5  ;;  %v1483_v57 = vmul.f32 0.25, %v1419_v13  ;;  %v1484_v63 = vmul.f32 0.25, %v1420_v59  ;;  %v1485_v45 = vmul.f32 0.25, %v1421_v12  ;;  %v147_v13 = vld [vmem:[%s2830_s14 + $0x20] sm:$0xff] }
  0x35   : > { %v1486_v49 = vmul.f32 0.25, %v1422_v41  ;;  %v1650_v26 = vrot.slane %v1471_v7, %v3699_v16  ;;  %v1654_v25 = vrot.slane %v1472_v11, %v3699_v16  ;;  %v1658_v35 = vrot.slane %v1473_v42, %v3699_v16  ;;  %v148_v11 = vld [vmem:[%s2830_s14 + $0x28] sm:$0xff] }
  0x36   : > { %v1662_v18 = vrot.slane %v1474_v47, %v3699_v16  ;;  %v1666_v28 = vrot.slane %v1475_v43, %v3699_v16  ;;  %v1670_v27 = vrot.slane %v1476_v46, %v3699_v16  ;;  %v1674_v36 = vrot.slane %v1477_v48, %v3699_v16 }
  0x37   : > { %v1678_v54 = vrot.slane %v1478_v44, %v3699_v16  ;;  %v1682_v58 = vrot.slane %v1479_v50, %v3699_v16  ;;  %v1686_v31 = vrot.slane %v1480_v52, %v3699_v16  ;;  %v1690_v60 = vrot.slane %v1481_v53, %v3699_v16  ;;  %v149_v50 = vld [vmem:[%s2830_s14 + $0x30] sm:$0xff] }
  0x38   : > { %v1694_v30 = vrot.slane %v1482_v56, %v3699_v16  ;;  %v1698_v39 = vrot.slane %v1483_v57, %v3699_v16  ;;  %v1702_v62 = vrot.slane %v1484_v63, %v3699_v16  ;;  %v1706_v23 = vrot.slane %v1485_v45, %v3699_v16 }
  0x39   : > { %v1710_v0 = vrot.slane %v1486_v49, %v3699_v16  ;;  %v1860_v33 = vsel %vm1839_vm1, %v1654_v25, %v1650_v26  ;;  %v1867_v1 = vsel %vm1839_vm1, %v1686_v31, %v1682_v58  ;;  %v207_v32 = vcombine.high %v143_v21, %v143_v21  ;;  %v150_v49 = vld [vmem:[%s2830_s14 + $0x38] sm:$0xff] }
  0x3a   : > { %v3023_v40 = vrot.slane %v143_v21, %v3700_v2  ;;  %v1861_v3 = vsel %vm1841_vm2, %v1658_v35, %v1860_v33  ;;  %v1868_v38 = vsel %vm1841_vm2, %v1690_v60, %v1867_v1  ;;  %v224_v6 = vcombine.high %v144_v61, %v144_v61 }
  0x3b   : > { %v3029_v8 = vrot.slane %v144_v61, %v3700_v2  ;;  %v1862_v9 = vsel %vm1843_vm3, %v1662_v18, %v1861_v3  ;;  %v1869_v51 = vsel %vm1843_vm3, %v1694_v30, %v1868_v38  ;;  %v3034_v10 = vrot.slane %v207_v32, %v3700_v2 }
  0x3c   : > { %v3038_v14 = vcombine.high %v3023_v40, %v3023_v40  ;;  %v1863_v15 = vsel %vm1845_vm4, %v1666_v28, %v1862_v9  ;;  %v1870_v17 = vsel %vm1845_vm4, %v1698_v39, %v1869_v51  ;;  %v3044_v20 = vrot.slane %v224_v6, %v3700_v2 }
  0x3d   : > { %v3048_v55 = vcombine.high %v3029_v8, %v3029_v8  ;;  %v1864_v22 = vsel %vm1847_vm5, %v1670_v27, %v1863_v15  ;;  %v1871_v24 = vsel %vm1847_vm5, %v1702_v62, %v1870_v17  ;;  %v3054_v29 = vcombine.high %v3034_v10, %v3034_v10 }
  0x3e   : > { %v241_v34 = vcombine.high %v145_v4, %v145_v4  ;;  %v1865_v37 = vsel %vm1849_vm6, %v1674_v36, %v1864_v22  ;;  %v1872_v5 = vsel %vm1849_vm6, %v1706_v23, %v1871_v24  ;;  %v3061_v59 = vcombine.high %v3044_v20, %v3044_v20 }
  0x3f   : > { %v3064_v12 = vrot.slane %v145_v4, %v3700_v2  ;;  %v3067_v41 = vsel %vm1851_vm7, %v1678_v54, %v1865_v37  ;;  %v3070_v7 = vsel %vm1851_vm7, %v1710_v0, %v1872_v5  ;;  %v258_v47 = vcombine.high %v146_v19, %v146_v19 }
  0x40   : > { %3701 = vst [vmem:[#allocation8_spill] sm:$0xff] %v3067_v41  ;;  %3702 = vst [vmem:[#allocation7_spill] sm:$0xff] %v3070_v7  ;;  %v3074_v42 = vrot.slane %v241_v34, %v3700_v2  ;;  %v3654_v43 = vrot.slane %v3067_v41, 7  ;;  %v3653_v46 = vrot.slane %v3070_v7, 7  ;;  %v3083_v44 = vrot.slane %v146_v19, %v3700_v2 }
  0x41   : > { %v3080_v48 = vcombine.high %v3064_v12, %v3064_v12  ;;  %v3091_v53 = vrot.slane %v258_v47, %v3700_v2  ;;  %v275_v56 = vcombine.high %v147_v13, %v147_v13  ;;  %v3094_v57 = vrot.slane %v147_v13, %v3700_v2 }
  0x42   : > { %v3088_v52 = vcombine.high %v3074_v42, %v3074_v42  ;;  %v3099_v63 = vsel %vm1921_vm0, 0.0, %v3654_v43  ;;  %v3104_v45 = vsel %vm1921_vm0, 0.0, %v3653_v46  ;;  %v3109_v26 = vcombine.high %v3083_v44, %v3083_v44 }
  0x43   : > { %3703 = vst [vmem:[#allocation6_spill] sm:$0xff] %v3094_v57  ;;  %3704 = vst [vmem:[#allocation11_spill] sm:$0xff] %v3099_v63  ;;  %v292_v25 = vcombine.high %v148_v11, %v148_v11  ;;  %v2596_v35 = vpack.i.bf16 %v3104_v45, %v3099_v63  ;;  %v3115_v18 = vcombine.high %v3091_v53, %v3091_v53  ;;  %v2418_v61 = vrot.slane %v3023_v40, 9 }
  0x44   : > { %3705 = vst [vmem:[#allocation10_spill] sm:$0xff] %v3104_v45  ;;  %v3118_v28 = vrot.slane %v275_v56, %v3700_v2  ;;  %v3122_v27 = vcombine.high %v3094_v57, %v3094_v57  ;;  %v3125_v36 = vrot.slane %v148_v11, %v3700_v2  ;;  %v309_v21 = vcombine.high %v149_v50, %v149_v50 }
  0x45   : > { %v3128_v54 = vrot.slane %v292_v25, %v3700_v2  ;;  %v3131_v58 = vrot.slane %v149_v50, %v3700_v2  ;;  %2597 = vrot.lane.b32.xlu0 %v2596_v35, %s2790_s15  ;;  %v326_v60 = vcombine.high %v150_v49, %v150_v49  ;;  %v3137_v30 = vrot.slane %v150_v49, %v3700_v2 }
  0x46   : > { %3706 = vst [vmem:[#allocation9_spill] sm:$0xff] %v3118_v28  ;;  %3707 = vst [vmem:[#allocation14_spill] sm:$0xff] %v3122_v27  ;;  %v291_v31 = vcombine.high %v3118_v28, %v3118_v28  ;;  %v307_v39 = vcombine.high %v3125_v36, %v3125_v36  ;;  %v3145_v23 = vrot.slane %v309_v21, %v3700_v2  ;;  %v2419_v32 = vrot.slane %v3038_v14, 9 }
  0x47   : > { %3708 = vst [vmem:[#allocation13_spill] sm:$0xff] %v3125_v36  ;;  %3709 = vst [vmem:[#allocation12_spill] sm:$0xff] %v3128_v54  ;;  %v308_v62 = vcombine.high %v3128_v54, %v3128_v54  ;;  %v324_v0 = vcombine.high %v3131_v58, %v3131_v58  ;;  %v3150_v33 = vrot.slane %v326_v60, %v3700_v2  ;;  %v2420_v3 = vrot.slane %v3034_v10, 9 }
  0x48   : > { %3710 = vst [vmem:[#allocation16_spill] sm:$0xff] %v3131_v58  ;;  %3711 = vst [vmem:[#allocation15_spill] sm:$0xff] %v3137_v30  ;;  %v3154_v1 = vcombine.high %v3137_v30, %v3137_v30  ;;  %v325_v38 = vcombine.high %v3145_v23, %v3145_v23  ;;  %v2421_v4 = vrot.slane %v3054_v29, 9  ;;  %v2422_v6 = vrot.slane %v3029_v8, 9 }
  0x49   : > { %3712 = vst [vmem:[#allocation17_spill] sm:$0xff] %v3145_v23  ;;  %3713 = vst [vmem:[#allocation18_spill] sm:$0xff] %v3150_v33  ;;  %v2423_v9 = vrot.slane %v3048_v55, 9  ;;  %v342_v51 = vcombine.high %v3150_v33, %v3150_v33  ;;  %v2424_v15 = vrot.slane %v3044_v20, 9  ;;  %v2425_v17 = vrot.slane %v3061_v59, 9 }
  0x4a   : > { %3714 = vst [vmem:[#allocation19_spill] sm:$0xff] %v3154_v1  ;;  %v2426_v19 = vrot.slane %v3064_v12, 9  ;;  %v2427_v22 = vrot.slane %v3080_v48, 9  ;;  %v2428_v24 = vrot.slane %v3074_v42, 9  ;;  %v2429_v34 = vrot.slane %v3088_v52, 9 }
  0x4b   : > { %v2430_v37 = vrot.slane %v3083_v44, 9  ;;  %v2431_v5 = vrot.slane %v3109_v26, 9  ;;  %v2432_v13 = vrot.slane %v3091_v53, 9  ;;  %v2433_v11 = vrot.slane %v3115_v18, 9 }
  0x4c   : > { %v2434_v47 = vrot.slane %v3094_v57, 9  ;;  %v2435_v50 = vrot.slane %v3122_v27, 9  ;;  %v2436_v56 = vrot.slane %v3118_v28, 9  ;;  %v2437_v49 = vrot.slane %v291_v31, 9 }
  0x4d   : > { %v2438_v25 = vrot.slane %v3125_v36, 9  ;;  %v2439_v35 = vrot.slane %v307_v39, 9  ;;  %v2440_v21 = vrot.slane %v3128_v54, 9  ;;  %v2441_v60 = vrot.slane %v308_v62, 9 }
  0x4e   : > { %v2442_v46 = vrot.slane %v3131_v58, 9  ;;  %v2443_v43 = vrot.slane %v324_v0, 9  ;;  %v2444_v45 = vrot.slane %v3145_v23, 9  ;;  %v2445_v7 = vrot.slane %v325_v38, 9 }
  0x4f   : > { %v2446_v41 = vrot.slane %v3137_v30, 9  ;;  %v2447_v63 = vrot.slane %v3154_v1, 9  ;;  %v2448_v2 = vrot.slane %v3150_v33, 9  ;;  %v2449_v16 = vrot.slane %v342_v51, 9 }
  0x50   : > { %v1263_v28 = vadd.f32 %v2418_v61, %v3023_v40  ;;  %v1264_v36 = vadd.f32 %v2419_v32, %v3038_v14  ;;  %v1265_v54 = vadd.f32 %v2420_v3, %v3034_v10  ;;  %v1266_v27 = vadd.f32 %v2421_v4, %v3054_v29  ;;  %v3715_v61 = vld [vmem:[#allocation6_spill] sm:$0xff]  ;;  %v3717_v3 = vld [vmem:[#allocation9_spill] sm:$0xff] }
  0x51   : > { %v1267_v58 = vadd.f32 %v2422_v6, %v3029_v8  ;;  %v1268_v23 = vadd.f32 %v2423_v9, %v3048_v55  ;;  %v1269_v57 = vadd.f32 %v2424_v15, %v3044_v20  ;;  %v1270_v30 = vadd.f32 %v2425_v17, %v3061_v59  ;;  %v3716_v32 = vld [vmem:[#allocation14_spill] sm:$0xff]  ;;  %v3719_v9 = vld [vmem:[#allocation12_spill] sm:$0xff] }
  0x52   : > { %v1271_v1 = vadd.f32 %v2426_v19, %v3064_v12  ;;  %v1272_v33 = vadd.f32 %v2427_v22, %v3080_v48  ;;  %v1273_v40 = vadd.f32 %v2428_v24, %v3074_v42  ;;  %v1274_v14 = vadd.f32 %v2429_v34, %v3088_v52  ;;  %v3718_v48 = vld [vmem:[#allocation13_spill] sm:$0xff]  ;;  %v3723_v34 = vld [vmem:[#allocation19_spill] sm:$0xff] }
  0x53   : > { %v1275_v10 = vadd.f32 %v2430_v37, %v3083_v44  ;;  %v1276_v29 = vadd.f32 %v2431_v5, %v3109_v26  ;;  %v1277_v8 = vadd.f32 %v2432_v13, %v3091_v53  ;;  %v1278_v55 = vadd.f32 %v2433_v11, %v3115_v18  ;;  %v3720_v44 = vld [vmem:[#allocation16_spill] sm:$0xff]  ;;  %v3721_v19 = vld [vmem:[#allocation17_spill] sm:$0xff]  ;;  %v3722_v18 = vld [vmem:[#allocation15_spill] sm:$0xff] }
  0x54   : > { %v1279_v20 = vadd.f32 %v2434_v47, %v3715_v61  ;;  %v1280_v59 = vadd.f32 %v2435_v50, %v3716_v32  ;;  %v1281_v12 = vadd.f32 %v2436_v56, %v3717_v3  ;;  %v1282_v4 = vadd.f32 %v2437_v49, %v291_v31  ;;  %v3724_v5 = vld [vmem:[#allocation18_spill] sm:$0xff] }
  0x55   : > { %v1283_v6 = vadd.f32 %v2438_v25, %v3718_v48  ;;  %v1284_v42 = vadd.f32 %v2439_v35, %v307_v39  ;;  %v1285_v52 = vadd.f32 %v2440_v21, %v3719_v9  ;;  %v1286_v15 = vadd.f32 %v2441_v60, %v308_v62 }
  0x56   : > { %v1287_v17 = vadd.f32 %v2442_v46, %v3720_v44  ;;  %v1288_v26 = vadd.f32 %v2443_v43, %v324_v0  ;;  %v1289_v53 = vadd.f32 %v2444_v45, %v3721_v19  ;;  %v1290_v22 = vadd.f32 %v2445_v7, %v325_v38  ;;  %v160_v44 = vld [vmem:[%s2830_s14 + $0x88] sm:$0xff]  ;;  %v3726_v19 = vld [vmem:[#allocation4_spill] sm:$0xff] }
  0x57   : > { %v1291_v24 = vadd.f32 %v2446_v41, %v3722_v18  ;;  %v1292_v37 = vadd.f32 %v2447_v63, %v3723_v34  ;;  %v1293_v13 = vadd.f32 %v2448_v2, %v3724_v5  ;;  %v1294_v11 = vadd.f32 %v2449_v16, %v342_v51  ;;  %v3728_v5 = vld [vmem:[#allocation2_spill] sm:$0xff] }
  0x58   : > { %v1391_v31 = vadd.f32 %v1271_v1, %v1263_v28  ;;  %v1392_v47 = vadd.f32 %v1272_v33, %v1264_v36  ;;  %v1393_v50 = vadd.f32 %v1273_v40, %v1265_v54  ;;  %v1394_v39 = vadd.f32 %v1274_v14, %v1266_v27  ;;  %v3725_v40 = vld [vmem:[#allocation3_spill] sm:$0xff] }
  0x59   : > { %v1395_v56 = vadd.f32 %v1275_v10, %v1267_v58  ;;  %v1396_v49 = vadd.f32 %v1276_v29, %v1268_v23  ;;  %v1397_v62 = vadd.f32 %v1277_v8, %v1269_v57  ;;  %v1398_v25 = vadd.f32 %v1278_v55, %v1270_v30 }
  0x5a   : > { %v1399_v46 = vadd.f32 %v1287_v17, %v1279_v20  ;;  %v1400_v43 = vadd.f32 %v1288_v26, %v1280_v59  ;;  %v1401_v0 = vadd.f32 %v1289_v53, %v1281_v12  ;;  %v1402_v45 = vadd.f32 %v1290_v22, %v1282_v4  ;;  %v3727_v22 = vld [vmem:[#allocation5_spill] sm:$0xff] }
  0x5b   : > { %v1403_v7 = vadd.f32 %v1291_v24, %v1283_v6  ;;  %v1404_v38 = vadd.f32 %v1292_v37, %v1284_v42  ;;  %v1405_v41 = vadd.f32 %v1293_v13, %v1285_v52  ;;  %v1406_v35 = vadd.f32 %v1294_v11, %v1286_v15  ;;  %v159_v6 = vld [vmem:[%s2830_s14 + $0x80] sm:$0xff] }
  0x5c   : > { %v1455_v63 = vmul.f32 0.25, %v1391_v31  ;;  %v1456_v2 = vmul.f32 0.25, %v1392_v47  ;;  %v1457_v16 = vmul.f32 0.25, %v1393_v50  ;;  %v1458_v28 = vmul.f32 0.25, %v1394_v39  ;;  %v161_v50 = vld [vmem:[%s2830_s14 + $0x90] sm:$0xff] }
  0x5d   : > { %v1459_v36 = vmul.f32 0.25, %v1395_v56  ;;  %v1460_v54 = vmul.f32 0.25, %v1396_v49  ;;  %v1461_v27 = vmul.f32 0.25, %v1397_v62  ;;  %v1462_v58 = vmul.f32 0.25, %v1398_v25 }
  0x5e   : > { %v1463_v23 = vmul.f32 0.25, %v1399_v46  ;;  %v1464_v57 = vmul.f32 0.25, %v1400_v43  ;;  %v1465_v30 = vmul.f32 0.25, %v1401_v0  ;;  %v1466_v33 = vmul.f32 0.25, %v1402_v45  ;;  %v162_v0 = vld [vmem:[%s2830_s14 + $0x98] sm:$0xff] }
  0x5f   : > { %v1467_v1 = vmul.f32 0.25, %v1403_v7  ;;  %v1468_v51 = vmul.f32 0.25, %v1404_v38  ;;  %v1469_v21 = vmul.f32 0.25, %v1405_v41  ;;  %v1470_v60 = vmul.f32 0.25, %v1406_v35 }
  0x60   : > { %v1586_v14 = vrot.slane %v1455_v63, %v3725_v40  ;;  %v1590_v10 = vrot.slane %v1456_v2, %v3725_v40  ;;  %v1594_v29 = vrot.slane %v1457_v16, %v3725_v40  ;;  %v1598_v8 = vrot.slane %v1458_v28, %v3725_v40 }
  0x61   : > { %v1602_v55 = vrot.slane %v1459_v36, %v3725_v40  ;;  %v1606_v61 = vrot.slane %v1460_v54, %v3725_v40  ;;  %v1610_v20 = vrot.slane %v1461_v27, %v3725_v40  ;;  %v1614_v32 = vrot.slane %v1462_v58, %v3725_v40 }
  0x62   : > { %v1618_v59 = vrot.slane %v1463_v23, %v3725_v40  ;;  %v1622_v3 = vrot.slane %v1464_v57, %v3725_v40  ;;  %v1626_v12 = vrot.slane %v1465_v30, %v3725_v40  ;;  %v1630_v4 = vrot.slane %v1466_v33, %v3725_v40 }
  0x63   : > { %v1634_v48 = vrot.slane %v1467_v1, %v3725_v40  ;;  %v1638_v42 = vrot.slane %v1468_v51, %v3725_v40  ;;  %v1642_v9 = vrot.slane %v1469_v21, %v3725_v40  ;;  %v1646_v52 = vrot.slane %v1470_v60, %v3725_v40 }
  0x64   : > { %v1840_v15 = vsel %vm1839_vm1, %v1590_v10, %v1586_v14  ;;  %v1853_v26 = vsel %vm1839_vm1, %v1622_v3, %v1618_v59  ;;  %v1957_v53 = vrot.slane %v3726_v19, 1  ;;  %v1958_v18 = vrot.slane %v3727_v22, 1 }
  0x65   : > { %v1842_v17 = vsel %vm1841_vm2, %v1594_v29, %v1840_v15  ;;  %v1854_v34 = vsel %vm1841_vm2, %v1626_v12, %v1853_v26  ;;  %v479_v37 = vcombine.high %v159_v6, %v159_v6  ;;  %v486_v13 = vrot.slane %v159_v6, %v3728_v5  ;;  %v3729_v29 = vld [vmem:[#allocation11_spill] sm:$0xff] }
  0x66   : > { %v1844_v24 = vsel %vm1843_vm3, %v1598_v8, %v1842_v17  ;;  %v1855_v31 = vsel %vm1843_vm3, %v1630_v4, %v1854_v34  ;;  %v3240_v47 = vsel %vm1956_vm8, %v1957_v53, %v1958_v18  ;;  %v496_v39 = vcombine.high %v160_v44, %v160_v44 }
  0x67   : > { %v1846_v11 = vsel %vm1845_vm4, %v1602_v55, %v1844_v24  ;;  %v1856_v49 = vsel %vm1845_vm4, %v1634_v48, %v1855_v31  ;;  %v493_v62 = vrot.slane %v479_v37, %v3728_v5  ;;  %v494_v25 = vcombine.high %v486_v13, %v486_v13 }
  0x68   : > { %v1848_v56 = vsel %vm1847_vm5, %v1606_v61, %v1846_v11  ;;  %v1857_v43 = vsel %vm1847_vm5, %v1638_v42, %v1856_v49  ;;  %v503_v45 = vrot.slane %v160_v44, %v3728_v5  ;;  %v510_v7 = vrot.slane %v496_v39, %v3728_v5 }
  0x69   : > { %v1850_v46 = vsel %vm1849_vm6, %v1610_v20, %v1848_v56  ;;  %v1858_v41 = vsel %vm1849_vm6, %v1642_v9, %v1857_v43  ;;  %v495_v35 = vcombine.high %v493_v62, %v493_v62  ;;  %v513_v63 = vcombine.high %v161_v50, %v161_v50 }
  0x6a   : > { %v1852_v38 = vsel %vm1851_vm7, %v1614_v32, %v1850_v46  ;;  %v3254_v2 = vsel %vm1851_vm7, %v1646_v52, %v1858_v41  ;;  %v511_v28 = vcombine.high %v503_v45, %v503_v45  ;;  %v512_v36 = vcombine.high %v510_v7, %v510_v7 }
  0x6b   : > { %v1904_v16 = vrot.slane %v1852_v38, 7  ;;  %v1905_v54 = vrot.slane %v3254_v2, 7  ;;  %v520_v27 = vrot.slane %v161_v50, %v3728_v5  ;;  %v527_v58 = vrot.slane %v513_v63, %v3728_v5  ;;  %v3730_v2 = vld [vmem:[#allocation8_spill] sm:$0xff] }
  0x6c   : > { %v530_v23 = vcombine.high %v162_v0, %v162_v0  ;;  %v537_v33 = vrot.slane %v162_v0, %v3728_v5  ;;  %v2482_v1 = vrot.slane %v486_v13, 9  ;;  %v2483_v59 = vrot.slane %v494_v25, 9 }
  0x6d   : > { %v3260_v57 = vsel %vm1921_vm0, 0.0, %v1904_v16  ;;  %v3263_v30 = vsel %vm1921_vm0, %v1904_v16, 0.0  ;;  %v3269_v51 = vsel %vm1921_vm0, 0.0, %v1905_v54  ;;  %v528_v14 = vcombine.high %v520_v27, %v520_v27 }
  0x6e   : > { %v1960_v21 = vrot.slane %v3260_v57, 1  ;;  %v1961_v60 = vrot.slane %v3263_v30, 1  ;;  %v2586_v10 = vpack.i.bf16 %v3269_v51, %v3260_v57  ;;  %v2591_v8 = vpack.i.bf16 %v3729_v29, %v3269_v51 }
  0x6f   : > { %v529_v55 = vcombine.high %v527_v58, %v527_v58  ;;  %v544_v61 = vrot.slane %v530_v23, %v3728_v5  ;;  %v545_v32 = vcombine.high %v537_v33, %v537_v33  ;;  %v2484_v3 = vrot.slane %v493_v62, 9 }
  0x70   : > { %v3279_v20 = vsel %vm1956_vm8, %v1960_v21, %v1961_v60  ;;  %2587 = vrot.lane.b32.xlu1 %v2586_v10, %s2790_s15  ;;  %v2485_v48 = vrot.slane %v495_v35, 9  ;;  %v2486_v6 = vrot.slane %v503_v45, 9  ;;  %v2487_v42 = vrot.slane %v511_v28, 9 }
  0x71   : > { %v2606_v12 = vpack.i.bf16 %v3279_v20, %v3240_v47  ;;  %v546_v4 = vcombine.high %v544_v61, %v544_v61  ;;  %v2488_v9 = vrot.slane %v510_v7, 9  ;;  %v2489_v52 = vrot.slane %v512_v36, 9 }
  0x72   : > { %v2490_v15 = vrot.slane %v520_v27, 9  ;;  %v2491_v44 = vrot.slane %v528_v14, 9  ;;  %v2492_v17 = vrot.slane %v527_v58, 9  ;;  %v2493_v26 = vrot.slane %v529_v55, 9 }
  0x73   : > { %2607 = vrot.lane.b32.xlu0 %v2606_v12, %s2791_s16  ;;  %v2494_v53 = vrot.slane %v537_v33, 9  ;;  %v2495_v18 = vrot.slane %v545_v32, 9  ;;  %v2496_v24 = vrot.slane %v544_v61, 9  ;;  %v2497_v34 = vrot.slane %v546_v4, 9 }
  0x74   : > { %v1327_v37 = vadd.f32 %v2482_v1, %v486_v13  ;;  %2592 = vrot.lane.b32.xlu1 %v2591_v8, %s2792_s17  ;;  %v1328_v11 = vadd.f32 %v2483_v59, %v494_v25  ;;  %v1329_v31 = vadd.f32 %v2484_v3, %v493_v62  ;;  %v1330_v50 = vadd.f32 %v2485_v48, %v495_v35 }
  0x75   : > { %v1331_v39 = vadd.f32 %v2486_v6, %v503_v45  ;;  %v1332_v56 = vadd.f32 %v2487_v42, %v511_v28  ;;  %v1333_v49 = vadd.f32 %v2488_v9, %v510_v7  ;;  %v1334_v46 = vadd.f32 %v2489_v52, %v512_v36 }
  0x76   : > { %v1335_v43 = vadd.f32 %v2490_v15, %v520_v27  ;;  %v1336_v0 = vadd.f32 %v2491_v44, %v528_v14  ;;  %v1337_v38 = vadd.f32 %v2492_v17, %v527_v58  ;;  %v1338_v41 = vadd.f32 %v2493_v26, %v529_v55 }
  0x77   : > { %v1339_v63 = vadd.f32 %v2494_v53, %v537_v33  ;;  %v1340_v16 = vadd.f32 %v2495_v18, %v545_v32  ;;  %v1341_v23 = vadd.f32 %v2496_v24, %v544_v61  ;;  %v1342_v21 = vadd.f32 %v2497_v34, %v546_v4 }
  0x78   : > { %v1423_v13 = vadd.f32 %v1335_v43, %v1327_v37  ;;  %v1424_v1 = vadd.f32 %v1336_v0, %v1328_v11  ;;  %v1425_v60 = vadd.f32 %v1337_v38, %v1329_v31  ;;  %v1426_v10 = vadd.f32 %v1338_v41, %v1330_v50 }
  0x79   : > { %v1427_v25 = vadd.f32 %v1339_v63, %v1331_v39  ;;  %v1428_v62 = vadd.f32 %v1340_v16, %v1332_v56  ;;  %v1429_v35 = vadd.f32 %v1341_v23, %v1333_v49  ;;  %v1430_v45 = vadd.f32 %v1342_v21, %v1334_v46 }
  0x7a   : > { %v1487_v28 = vmul.f32 0.25, %v1423_v13  ;;  %v1488_v7 = vmul.f32 0.25, %v1424_v1  ;;  %v1489_v36 = vmul.f32 0.25, %v1425_v60  ;;  %v1490_v27 = vmul.f32 0.25, %v1426_v10  ;;  %v3732_v1 = vld [vmem:[#allocation7_spill] sm:$0xff] }
  0x7b   : > { %v1491_v8 = vmul.f32 0.25, %v1427_v25  ;;  %v1492_v14 = vmul.f32 0.25, %v1428_v62  ;;  %v1493_v58 = vmul.f32 0.25, %v1429_v35  ;;  %v1494_v55 = vmul.f32 0.25, %v1430_v45  ;;  %v3734_v25 = vld [vmem:[#allocation10_spill] sm:$0xff] }
  0x7c   : > { %v1714_v33 = vrot.slane %v1487_v28, %v3725_v40  ;;  %v1718_v61 = vrot.slane %v1488_v7, %v3725_v40  ;;  %v1722_v32 = vrot.slane %v1489_v36, %v3725_v40  ;;  %v1726_v59 = vrot.slane %v1490_v27, %v3725_v40  ;;  %v163_v27 = vld [vmem:[%s2830_s14 + $0xa0] sm:$0xff] }
  0x7d   : > { %v1730_v3 = vrot.slane %v1491_v8, %v3725_v40  ;;  %v1734_v12 = vrot.slane %v1492_v14, %v3725_v40  ;;  %v1738_v4 = vrot.slane %v1493_v58, %v3725_v40  ;;  %v1742_v48 = vrot.slane %v1494_v55, %v3725_v40 }
  0x7e   : > { %v1982_v6 = vrot.slane %v3726_v19, 2  ;;  %v1874_v42 = vsel %vm1839_vm1, %v1718_v61, %v1714_v33  ;;  %v1983_v9 = vrot.slane %v3727_v22, 2  ;;  %v1985_v52 = vrot.slane %v3260_v57, 2  ;;  %v164_v33 = vld [vmem:[%s2830_s14 + $0xa8] sm:$0xff]  ;;  %v165_v61 = vld [vmem:[%s2830_s14 + $0xb0] sm:$0xff] }
  0x7f   : > { %v1986_v15 = vrot.slane %v3263_v30, 2  ;;  %v1875_v44 = vsel %vm1841_vm2, %v1722_v32, %v1874_v42  ;;  %v1933_v17 = vsel %vm1921_vm0, %v1905_v54, 0.0  ;;  %v1963_v26 = vrot.slane %v3269_v51, 1 }
  0x80   : > { %v1988_v53 = vrot.slane %v3269_v51, 2  ;;  %v1876_v18 = vsel %vm1843_vm3, %v1726_v59, %v1875_v44  ;;  %v3307_v24 = vsel %vm1981_vm9, %v1982_v6, %v1983_v9  ;;  %v1964_v34 = vrot.slane %v1933_v17, 1 }
  0x81   : > { %v1987_v22 = vsel %vm1981_vm9, %v1985_v52, %v1986_v15  ;;  %v1877_v30 = vsel %vm1845_vm4, %v1730_v3, %v1876_v18  ;;  %v1989_v11 = vrot.slane %v1933_v17, 2  ;;  %v3731_v31 = vrot.slane %v3730_v2, 7 }
  0x82   : > { %v2611_v37 = vpack.i.bf16 %v1987_v22, %v3307_v24  ;;  %v1878_v50 = vsel %vm1847_vm5, %v1734_v12, %v1877_v30  ;;  %v1965_v39 = vsel %vm1956_vm8, %v1963_v26, %v1964_v34  ;;  %v1991_v56 = vrot.slane %v3729_v29, 2 }
  0x83   : > { %v1934_v54 = vsel %vm1921_vm0, %v3731_v31, 0.0  ;;  %v1879_v46 = vsel %vm1849_vm6, %v1738_v4, %v1878_v50  ;;  %v2616_v43 = vpack.i.bf16 %v1965_v39, %v3279_v20  ;;  %v1990_v0 = vsel %vm1981_vm9, %v1988_v53, %v1989_v11  ;;  %v166_v53 = vld [vmem:[%s2830_s14 + $0xb8] sm:$0xff] }
  0x84   : > { %v1992_v49 = vrot.slane %v1934_v54, 2  ;;  %2612 = vrot.lane.b32.xlu0 %v2611_v37, %s2793_s18  ;;  %v1966_v38 = vrot.slane %v3729_v29, 1  ;;  %v1880_v41 = vsel %vm1851_vm7, %v1742_v48, %v1879_v46  ;;  %v2621_v63 = vpack.i.bf16 %v1990_v0, %v1987_v22 }
  0x85   : > { %v1967_v23 = vrot.slane %v1934_v54, 1  ;;  %v1908_v21 = vrot.slane %v1880_v41, 7  ;;  %v3733_v60 = vrot.slane %v3732_v1, 7  ;;  %v1969_v62 = vrot.slane %v3734_v25, 1 }
  0x86   : > { %v3325_v16 = vsel %vm1981_vm9, %v1991_v56, %v1992_v49  ;;  %v1994_v45 = vrot.slane %v3734_v25, 2  ;;  %v547_v6 = vcombine.high %v163_v27, %v163_v27  ;;  %v554_v42 = vrot.slane %v163_v27, %v3728_v5 }
  0x87   : > { %v3328_v13 = vpack.i.bf16 %v3325_v16, %v1990_v0  ;;  %v1935_v20 = vsel %vm1921_vm0, %v3733_v60, 0.0  ;;  %v3334_v10 = vsel %vm1956_vm8, %v1966_v38, %v1967_v23  ;;  %v3339_v28 = vsel %vm1921_vm0, 0.0, %v1908_v21 }
  0x88   : > { %v1970_v35 = vrot.slane %v1935_v20, 1  ;;  %2622 = vrot.lane.b32.xlu0 %v2621_v63, %s2794_s19  ;;  %v2626_v7 = vpack.i.bf16 %v3334_v10, %v1965_v39  ;;  %v1995_v36 = vrot.slane %v1935_v20, 2  ;;  %v2601_v8 = vpack.i.bf16 %v3339_v28, %v3734_v25 }
  0x89   : > { %v1936_v58 = vsel %vm1921_vm0, %v1908_v21, 0.0  ;;  %v1972_v55 = vrot.slane %v3339_v28, 1  ;;  %v1997_v12 = vrot.slane %v3339_v28, 2  ;;  %v564_v52 = vcombine.high %v164_v33, %v164_v33 }
  0x8a   : > { %v3347_v14 = vsel %vm1956_vm8, %v1969_v62, %v1970_v35  ;;  %v1996_v59 = vsel %vm1981_vm9, %v1994_v45, %v1995_v36  ;;  %v1973_v3 = vrot.slane %v1936_v58, 1  ;;  %2602 = vrot.lane.b32.xlu1 %v2601_v8, %s2792_s17  ;;  %v1998_v48 = vrot.slane %v1936_v58, 2 }
  0x8b   : > { %v2646_v32 = vpack.i.bf16 %v3347_v14, %v3334_v10  ;;  %v2651_v4 = vpack.i.bf16 %v1996_v59, %v3325_v16  ;;  %v571_v15 = vrot.slane %v164_v33, %v3728_v5  ;;  %v581_v44 = vcombine.high %v165_v61, %v165_v61  ;;  %v168_v10 = vld [vmem:[%s2830_s14 + $0xc8] sm:$0xff] }
  0x8c   : > { %2627 = vrot.lane.b32.xlu0 %v2626_v7, %s2795_s20  ;;  %v3362_v9 = vsel %vm1956_vm8, %v1972_v55, %v1973_v3  ;;  %v3370_v26 = vsel %vm1981_vm9, %v1997_v12, %v1998_v48  ;;  %v561_v18 = vrot.slane %v547_v6, %v3728_v5  ;;  %v562_v34 = vcombine.high %v554_v42, %v554_v42 }
  0x8d   : > { %v3367_v17 = vpack.i.bf16 %v3362_v9, %v3347_v14  ;;  %v3375_v22 = vpack.i.bf16 %v3370_v26, %v1996_v59  ;;  %v578_v30 = vrot.slane %v564_v52, %v3728_v5  ;;  %v579_v11 = vcombine.high %v571_v15, %v571_v15 }
  0x8e   : > { %2617 = vrot.lane.b32.xlu1 %v2616_v43, %s2796_s21  ;;  %v563_v37 = vcombine.high %v561_v18, %v561_v18  ;;  %v588_v2 = vrot.slane %v165_v61, %v3728_v5  ;;  %v595_v31 = vrot.slane %v581_v44, %v3728_v5  ;;  %v598_v50 = vcombine.high %v166_v53, %v166_v53 }
  0x8f   : > { %v580_v54 = vcombine.high %v578_v30, %v578_v30  ;;  %v605_v39 = vrot.slane %v166_v53, %v3728_v5  ;;  %v2498_v56 = vrot.slane %v554_v42, 9  ;;  %v2499_v0 = vrot.slane %v562_v34, 9 }
  0x90   : > { %2637 = vrot.lane.b32.xlu0 %v2626_v7, %s2791_s16  ;;  %v596_v49 = vcombine.high %v588_v2, %v588_v2  ;;  %v597_v46 = vcombine.high %v595_v31, %v595_v31  ;;  %v2500_v38 = vrot.slane %v561_v18, 9  ;;  %v612_v41 = vrot.slane %v598_v50, %v3728_v5 }
  0x91   : > { %v613_v43 = vcombine.high %v605_v39, %v605_v39  ;;  %v2501_v63 = vrot.slane %v563_v37, 9  ;;  %v2502_v16 = vrot.slane %v571_v15, 9  ;;  %v2503_v23 = vrot.slane %v579_v11, 9 }
  0x92   : > { %2632 = vrot.lane.b32.xlu1 %v3328_v13, %s2797_s22  ;;  %v2504_v21 = vrot.slane %v578_v30, 9  ;;  %v2505_v1 = vrot.slane %v580_v54, 9  ;;  %v2506_v60 = vrot.slane %v588_v2, 9  ;;  %v614_v20 = vcombine.high %v612_v41, %v612_v41 }
  0x93   : > { %v2507_v62 = vrot.slane %v596_v49, 9  ;;  %v2508_v35 = vrot.slane %v595_v31, 9  ;;  %v2509_v45 = vrot.slane %v597_v46, 9  ;;  %v2510_v7 = vrot.slane %v605_v39, 9 }
  0x94   : > { %2652 = vrot.lane.b32.xlu0 %v2651_v4, %s2794_s19  ;;  %v2511_v36 = vrot.slane %v613_v43, 9  ;;  %v2512_v27 = vrot.slane %v612_v41, 9  ;;  %v1343_v8 = vadd.f32 %v2498_v56, %v554_v42  ;;  %v2513_v58 = vrot.slane %v614_v20, 9 }
  0x95   : > { %v1344_v55 = vadd.f32 %v2499_v0, %v562_v34  ;;  %v1345_v33 = vadd.f32 %v2500_v38, %v561_v18  ;;  %v1346_v61 = vadd.f32 %v2501_v63, %v563_v37  ;;  %v1347_v59 = vadd.f32 %v2502_v16, %v571_v15 }
  0x96   : > { %2642 = vrot.lane.b32.xlu1 %v3328_v13, %s2793_s18  ;;  %v1348_v3 = vadd.f32 %v2503_v23, %v579_v11  ;;  %v1349_v12 = vadd.f32 %v2504_v21, %v578_v30  ;;  %v1350_v48 = vadd.f32 %v2505_v1, %v580_v54  ;;  %v1351_v4 = vadd.f32 %v2506_v60, %v588_v2 }
  0x97   : > { %v1352_v6 = vadd.f32 %v2507_v62, %v596_v49  ;;  %v1353_v52 = vadd.f32 %v2508_v35, %v595_v31  ;;  %v1354_v44 = vadd.f32 %v2509_v45, %v597_v46  ;;  %v1355_v53 = vadd.f32 %v2510_v7, %v605_v39 }
  0x98   : > { %2657 = vrot.lane.b32.xlu0 %v3367_v17, %s2795_s20  ;;  %v1356_v42 = vadd.f32 %v2511_v36, %v613_v43  ;;  %v1357_v50 = vadd.f32 %v2512_v27, %v612_v41  ;;  %v1358_v34 = vadd.f32 %v2513_v58, %v614_v20  ;;  %v1431_v18 = vadd.f32 %v1351_v4, %v1343_v8  ;;  %v167_v43 = vld [vmem:[%s2830_s14 + $0xc0] sm:$0xff]  ;;  %v170_v36 = vld [vmem:[%s2830_s14 + $0xd8] sm:$0xff] }
  0x99   : > { %v1432_v37 = vadd.f32 %v1352_v6, %v1344_v55  ;;  %v1433_v56 = vadd.f32 %v1353_v52, %v1345_v33  ;;  %v1434_v13 = vadd.f32 %v1354_v44, %v1346_v61  ;;  %v1435_v15 = vadd.f32 %v1355_v53, %v1347_v59 }
  0x9a   : > { %2647 = vrot.lane.b32.xlu1 %v2646_v32, %s2796_s21  ;;  %v1436_v30 = vadd.f32 %v1356_v42, %v1348_v3  ;;  %v1437_v11 = vadd.f32 %v1357_v50, %v1349_v12  ;;  %v1438_v2 = vadd.f32 %v1358_v34, %v1350_v48  ;;  %v1495_v31 = vmul.f32 0.25, %v1431_v18 }
  0x9b   : > { %v1496_v54 = vmul.f32 0.25, %v1432_v37  ;;  %v1497_v39 = vmul.f32 0.25, %v1433_v56  ;;  %v1498_v49 = vmul.f32 0.25, %v1434_v13  ;;  %v1499_v46 = vmul.f32 0.25, %v1435_v15 }
  0x9c   : > { %2667 = vrot.lane.b32.xlu0 %v3367_v17, %s2791_s16  ;;  %v1500_v0 = vmul.f32 0.25, %v1436_v30  ;;  %v1501_v38 = vmul.f32 0.25, %v1437_v11  ;;  %v1502_v41 = vmul.f32 0.25, %v1438_v2  ;;  %v1746_v14 = vrot.slane %v1495_v31, %v3725_v40  ;;  %v169_v17 = vld [vmem:[%s2830_s14 + $0xd0] sm:$0xff] }
  0x9d   : > { %v1750_v32 = vrot.slane %v1496_v54, %v3725_v40  ;;  %v1754_v63 = vrot.slane %v1497_v39, %v3725_v40  ;;  %v1758_v16 = vrot.slane %v1498_v49, %v3725_v40  ;;  %v1762_v23 = vrot.slane %v1499_v46, %v3725_v40 }
  0x9e   : > { %2662 = vrot.lane.b32.xlu1 %v3375_v22, %s2797_s22  ;;  %v1766_v21 = vrot.slane %v1500_v0, %v3725_v40  ;;  %v1770_v1 = vrot.slane %v1501_v38, %v3725_v40  ;;  %v1774_v60 = vrot.slane %v1502_v41, %v3725_v40  ;;  %v615_v62 = vcombine.high %v167_v43, %v167_v43 }
  0x9f   : > { %v1881_v20 = vsel %vm1839_vm1, %v1750_v32, %v1746_v14  ;;  %v622_v35 = vrot.slane %v167_v43, %v3728_v5  ;;  %v632_v45 = vcombine.high %v168_v10, %v168_v10  ;;  %v639_v27 = vrot.slane %v168_v10, %v3728_v5 }
  0xa0   : > { %v1882_v7 = vsel %vm1841_vm2, %v1754_v63, %v1881_v20  ;;  %v649_v8 = vcombine.high %v169_v17, %v169_v17  ;;  %v656_v58 = vrot.slane %v169_v17, %v3728_v5  ;;  %v629_v33 = vrot.slane %v615_v62, %v3728_v5 }
  0xa1   : > { %v1883_v55 = vsel %vm1843_vm3, %v1758_v16, %v1882_v7  ;;  %v630_v61 = vcombine.high %v622_v35, %v622_v35  ;;  %v646_v59 = vrot.slane %v632_v45, %v3728_v5  ;;  %v647_v12 = vcombine.high %v639_v27, %v639_v27 }
  0xa2   : > { %2677 = vrot.lane.b32.xlu1 %v3375_v22, %s2793_s18  ;;  %v1884_v3 = vsel %vm1845_vm4, %v1762_v23, %v1883_v55  ;;  %v663_v48 = vrot.slane %v649_v8, %v3728_v5  ;;  %v664_v4 = vcombine.high %v656_v58, %v656_v58  ;;  %v631_v52 = vcombine.high %v629_v33, %v629_v33 }
  0xa3   : > { %v1885_v6 = vsel %vm1847_vm5, %v1766_v21, %v1884_v3  ;;  %v648_v44 = vcombine.high %v646_v59, %v646_v59  ;;  %v666_v53 = vcombine.high %v170_v36, %v170_v36  ;;  %v673_v34 = vrot.slane %v170_v36, %v3728_v5 }
  0xa4   : > { %v1886_v42 = vsel %vm1849_vm6, %v1770_v1, %v1885_v6  ;;  %v665_v50 = vcombine.high %v663_v48, %v663_v48  ;;  %v2514_v18 = vrot.slane %v622_v35, 9  ;;  %v2515_v56 = vrot.slane %v630_v61, 9 }
  0xa5   : > { %v1887_v37 = vsel %vm1851_vm7, %v1774_v60, %v1886_v42  ;;  %v680_v22 = vrot.slane %v666_v53, %v3728_v5  ;;  %v2516_v13 = vrot.slane %v629_v33, 9  ;;  %v681_v30 = vcombine.high %v673_v34, %v673_v34 }
  0xa6   : > { %v1909_v15 = vrot.slane %v1887_v37, 7  ;;  %v2517_v11 = vrot.slane %v631_v52, 9  ;;  %v2518_v2 = vrot.slane %v639_v27, 9  ;;  %v2519_v54 = vrot.slane %v647_v12, 9 }
  0xa7   : > { %v682_v31 = vcombine.high %v680_v22, %v680_v22  ;;  %v2520_v39 = vrot.slane %v646_v59, 9  ;;  %v2521_v49 = vrot.slane %v648_v44, 9  ;;  %v2522_v38 = vrot.slane %v656_v58, 9 }
  0xa8   : > { %v3429_v46 = vsel %vm1921_vm0, 0.0, %v1909_v15  ;;  %v1937_v0 = vsel %vm1921_vm0, %v1909_v15, 0.0  ;;  %v2523_v41 = vrot.slane %v664_v4, 9  ;;  %v2524_v16 = vrot.slane %v663_v48, 9 }
  0xa9   : > { %v2671_v43 = vpack.i.bf16 %v3429_v46, %v3339_v28  ;;  %v1975_v10 = vrot.slane %v3429_v46, 1  ;;  %v1976_v14 = vrot.slane %v1937_v0, 1  ;;  %v2000_v32 = vrot.slane %v3429_v46, 2 }
  0xaa   : > { %v2001_v63 = vrot.slane %v1937_v0, 2  ;;  %v2525_v17 = vrot.slane %v665_v50, 9  ;;  %v2526_v23 = vrot.slane %v673_v34, 9  ;;  %v2527_v1 = vrot.slane %v681_v30, 9 }
  0xab   : > { %2672 = vrot.lane.b32.xlu0 %v2671_v43, %s2790_s15  ;;  %v3438_v21 = vsel %vm1956_vm8, %v1975_v10, %v1976_v14  ;;  %v2528_v60 = vrot.slane %v680_v22, 9  ;;  %v2529_v20 = vrot.slane %v682_v31, 9  ;;  %v1359_v7 = vadd.f32 %v2514_v18, %v622_v35 }
  0xac   : > { %v2681_v62 = vpack.i.bf16 %v3438_v21, %v3362_v9  ;;  %v3443_v45 = vsel %vm1981_vm9, %v2000_v32, %v2001_v63  ;;  %v1360_v36 = vadd.f32 %v2515_v56, %v630_v61  ;;  %v1361_v55 = vadd.f32 %v2516_v13, %v629_v33 }
  0xad   : > { %v2686_v8 = vpack.i.bf16 %v3443_v45, %v3370_v26  ;;  %v1362_v3 = vadd.f32 %v2517_v11, %v631_v52  ;;  %v1363_v6 = vadd.f32 %v2518_v2, %v639_v27  ;;  %v1364_v53 = vadd.f32 %v2519_v54, %v647_v12 }
  0xae   : > { %2682 = vrot.lane.b32.xlu1 %v2681_v62, %s2796_s21  ;;  %v1365_v42 = vadd.f32 %v2520_v39, %v646_v59  ;;  %v1366_v37 = vadd.f32 %v2521_v49, %v648_v44  ;;  %v1367_v15 = vadd.f32 %v2522_v38, %v656_v58  ;;  %v1368_v9 = vadd.f32 %v2523_v41, %v664_v4  ;;  %v173_v41 = vld [vmem:[%s2830_s14 + $0xf0] sm:$0xff]  ;;  %v174_v62 = vld [vmem:[%s2830_s14 + $0xf8] sm:$0xff] }
  0xaf   : > { %2687 = vrot.lane.b32.xlu0 %v2686_v8, %s2794_s19  ;;  %v1369_v0 = vadd.f32 %v2524_v16, %v663_v48  ;;  %v1370_v43 = vadd.f32 %v2525_v17, %v665_v50  ;;  %v1371_v10 = vadd.f32 %v2526_v23, %v673_v34  ;;  %v1372_v35 = vadd.f32 %v2527_v1, %v681_v30  ;;  %v171_v34 = vld [vmem:[%s2830_s14 + $0xe0] sm:$0xff] }
  0xb0   : > { %v1373_v61 = vadd.f32 %v2528_v60, %v680_v22  ;;  %v1374_v18 = vadd.f32 %v2529_v20, %v682_v31  ;;  %v1439_v26 = vadd.f32 %v1367_v15, %v1359_v7  ;;  %v1440_v33 = vadd.f32 %v1368_v9, %v1360_v36  ;;  %v172_v31 = vld [vmem:[%s2830_s14 + $0xe8] sm:$0xff] }
  0xb1   : > { %v1441_v52 = vadd.f32 %v1369_v0, %v1361_v55  ;;  %v1442_v27 = vadd.f32 %v1370_v43, %v1362_v3  ;;  %v1443_v56 = vadd.f32 %v1371_v10, %v1363_v6  ;;  %v1444_v12 = vadd.f32 %v1372_v35, %v1364_v53 }
  0xb2   : > { %v1445_v59 = vadd.f32 %v1373_v61, %v1365_v42  ;;  %v1446_v44 = vadd.f32 %v1374_v18, %v1366_v37  ;;  %v1503_v58 = vmul.f32 0.25, %v1439_v26  ;;  %v1504_v13 = vmul.f32 0.25, %v1440_v33 }
  0xb3   : > { %v1505_v4 = vmul.f32 0.25, %v1441_v52  ;;  %v1506_v48 = vmul.f32 0.25, %v1442_v27  ;;  %v1507_v50 = vmul.f32 0.25, %v1443_v56  ;;  %v1508_v30 = vmul.f32 0.25, %v1444_v12 }
  0xb4   : > { %v1509_v11 = vmul.f32 0.25, %v1445_v59  ;;  %v1510_v22 = vmul.f32 0.25, %v1446_v44  ;;  %v1778_v2 = vrot.slane %v1503_v58, %v3725_v40  ;;  %v1782_v54 = vrot.slane %v1504_v13, %v3725_v40 }
  0xb5   : > { %v1786_v39 = vrot.slane %v1505_v4, %v3725_v40  ;;  %v1790_v49 = vrot.slane %v1506_v48, %v3725_v40  ;;  %v1794_v38 = vrot.slane %v1507_v50, %v3725_v40  ;;  %v1798_v14 = vrot.slane %v1508_v30, %v3725_v40 }
  0xb6   : > { %v1802_v32 = vrot.slane %v1509_v11, %v3725_v40  ;;  %v1806_v63 = vrot.slane %v1510_v22, %v3725_v40  ;;  %v683_v16 = vcombine.high %v171_v34, %v171_v34  ;;  %v1888_v17 = vsel %vm1839_vm1, %v1782_v54, %v1778_v2 }
  0xb7   : > { %v690_v23 = vrot.slane %v171_v34, %v3728_v5  ;;  %v700_v1 = vcombine.high %v172_v31, %v172_v31  ;;  %v707_v60 = vrot.slane %v172_v31, %v3728_v5  ;;  %v1889_v20 = vsel %vm1841_vm2, %v1786_v39, %v1888_v17 }
  0xb8   : > { %v697_v7 = vrot.slane %v683_v16, %v3728_v5  ;;  %v717_v36 = vcombine.high %v173_v41, %v173_v41  ;;  %v724_v8 = vrot.slane %v173_v41, %v3728_v5  ;;  %v1890_v55 = vsel %vm1843_vm3, %v1790_v49, %v1889_v20 }
  0xb9   : > { %v698_v3 = vcombine.high %v690_v23, %v690_v23  ;;  %v714_v6 = vrot.slane %v700_v1, %v3728_v5  ;;  %v715_v53 = vcombine.high %v707_v60, %v707_v60  ;;  %v1891_v42 = vsel %vm1845_vm4, %v1794_v38, %v1890_v55 }
  0xba   : > { %v699_v37 = vcombine.high %v697_v7, %v697_v7  ;;  %v731_v15 = vrot.slane %v717_v36, %v3728_v5  ;;  %v732_v9 = vcombine.high %v724_v8, %v724_v8  ;;  %v1892_v0 = vsel %vm1847_vm5, %v1798_v14, %v1891_v42 }
  0xbb   : > { %v716_v43 = vcombine.high %v714_v6, %v714_v6  ;;  %v734_v10 = vcombine.high %v174_v62, %v174_v62  ;;  %v741_v35 = vrot.slane %v174_v62, %v3728_v5  ;;  %v1893_v61 = vsel %vm1849_vm6, %v1802_v32, %v1892_v0 }
  0xbc   : > { %v733_v18 = vcombine.high %v731_v15, %v731_v15  ;;  %v2530_v26 = vrot.slane %v690_v23, 9  ;;  %v2531_v33 = vrot.slane %v698_v3, 9  ;;  %v1894_v52 = vsel %vm1851_vm7, %v1806_v63, %v1893_v61 }
  0xbd   : > { %v748_v27 = vrot.slane %v734_v10, %v3728_v5  ;;  %v749_v56 = vcombine.high %v741_v35, %v741_v35  ;;  %v2532_v12 = vrot.slane %v697_v7, 9  ;;  %v1910_v59 = vrot.slane %v1894_v52, 7 }
  0xbe   : > { %v2533_v44 = vrot.slane %v699_v37, 9  ;;  %v2534_v58 = vrot.slane %v707_v60, 9  ;;  %v2535_v13 = vrot.slane %v715_v53, 9  ;;  %v2536_v48 = vrot.slane %v714_v6, 9 }
  0xbf   : > { %v750_v4 = vcombine.high %v748_v27, %v748_v27  ;;  %v2537_v50 = vrot.slane %v716_v43, 9  ;;  %v2538_v34 = vrot.slane %v724_v8, 9  ;;  %v3477_v30 = vsel %vm1921_vm0, 0.0, %v1910_v59 }
  0xc0   : > { %v1938_v11 = vsel %vm1921_vm0, %v1910_v59, 0.0  ;;  %v2539_v22 = vrot.slane %v732_v9, 9  ;;  %v2540_v2 = vrot.slane %v731_v15, 9  ;;  %v2691_v5 = vpack.i.bf16 %v3477_v30, %v3429_v46 }
  0xc1   : > { %v1978_v31 = vrot.slane %v3477_v30, 1  ;;  %v1979_v54 = vrot.slane %v1938_v11, 1  ;;  %v2003_v39 = vrot.slane %v3477_v30, 2  ;;  %v2004_v49 = vrot.slane %v1938_v11, 2 }
  0xc2   : > { %v2541_v38 = vrot.slane %v733_v18, 9  ;;  %v2542_v41 = vrot.slane %v741_v35, 9  ;;  %v2543_v14 = vrot.slane %v749_v56, 9  ;;  %2692 = vrot.lane.b32.xlu1 %v2691_v5, %s2792_s17  ;;  %v2544_v63 = vrot.slane %v748_v27, 9 }
  0xc3   : > { %v3486_v32 = vsel %vm1956_vm8, %v1978_v31, %v1979_v54  ;;  %v2545_v16 = vrot.slane %v750_v4, 9  ;;  %v1375_v17 = vadd.f32 %v2530_v26, %v690_v23  ;;  %v3491_v20 = vsel %vm1981_vm9, %v2003_v39, %v2004_v49 }
  0xc4   : > { %v2696_v1 = vpack.i.bf16 %v3486_v32, %v3438_v21  ;;  %v1376_v62 = vadd.f32 %v2531_v33, %v698_v3  ;;  %v2701_v36 = vpack.i.bf16 %v3491_v20, %v3443_v45  ;;  %v1377_v55 = vadd.f32 %v2532_v12, %v697_v7 }
  0xc5   : > { %v1378_v42 = vadd.f32 %v2533_v44, %v699_v37  ;;  %v1379_v0 = vadd.f32 %v2534_v58, %v707_v60  ;;  %v1380_v10 = vadd.f32 %v2535_v13, %v715_v53  ;;  %v1381_v61 = vadd.f32 %v2536_v48, %v714_v6 }
  0xc6   : > { %2697 = vrot.lane.b32.xlu0 %v2696_v1, %s2795_s20  ;;  %v1382_v52 = vadd.f32 %v2537_v50, %v716_v43  ;;  %2702 = vrot.lane.b32.xlu1 %v2701_v36, %s2797_s22  ;;  %v1383_v23 = vadd.f32 %v2538_v34, %v724_v8  ;;  %v1384_v26 = vadd.f32 %v2539_v22, %v732_v9  ;;  %vm2215_vm12 = vcmask 64512  }
  0xc7   : > { %v1385_v21 = vadd.f32 %v2540_v2, %v731_v15  ;;  %v1386_v59 = vadd.f32 %v2541_v38, %v733_v18  ;;  %v1387_v11 = vadd.f32 %v2542_v41, %v741_v35  ;;  %v1388_v5 = vadd.f32 %v2543_v14, %v749_v56 }
  0xc8   : > { %v1389_v3 = vadd.f32 %v2544_v63, %v748_v27  ;;  %v1390_v33 = vadd.f32 %v2545_v16, %v750_v4  ;;  %v1447_v31 = vadd.f32 %v1383_v23, %v1375_v17  ;;  %v1448_v45 = vadd.f32 %v1384_v26, %v1376_v62 }
  0xc9   : > { %v1449_v7 = vadd.f32 %v1385_v21, %v1377_v55  ;;  %v1450_v37 = vadd.f32 %v1386_v59, %v1378_v42  ;;  %v1451_v60 = vadd.f32 %v1387_v11, %v1379_v0  ;;  %v1452_v53 = vadd.f32 %v1388_v5, %v1380_v10 }
  0xca   : > { %2707 = vrot.lane.b32.xlu0 %v2696_v1, %s2791_s16  ;;  %v1453_v6 = vadd.f32 %v1389_v3, %v1381_v61  ;;  %v1454_v43 = vadd.f32 %v1390_v33, %v1382_v52  ;;  %2712 = vrot.lane.b32.xlu1 %v2701_v36, %s2793_s18  ;;  %v1511_v8 = vmul.f32 0.25, %v1447_v31  ;;  %v1512_v9 = vmul.f32 0.25, %v1448_v45 }
  0xcb   : > { %v1513_v15 = vmul.f32 0.25, %v1449_v7  ;;  %v1514_v18 = vmul.f32 0.25, %v1450_v37  ;;  %v1515_v35 = vmul.f32 0.25, %v1451_v60  ;;  %v1516_v56 = vmul.f32 0.25, %v1452_v53 }
  0xcc   : > { %v1517_v27 = vmul.f32 0.25, %v1453_v6  ;;  %v1518_v12 = vmul.f32 0.25, %v1454_v43  ;;  %v1810_v44 = vrot.slane %v1511_v8, %v3725_v40  ;;  %v1814_v58 = vrot.slane %v1512_v9, %v3725_v40 }
  0xcd   : > { %v1818_v13 = vrot.slane %v1513_v15, %v3725_v40  ;;  %v1822_v4 = vrot.slane %v1514_v18, %v3725_v40  ;;  %v1826_v48 = vrot.slane %v1515_v35, %v3725_v40  ;;  %v1830_v50 = vrot.slane %v1516_v56, %v3725_v40 }
  0xce   : > { %v1895_v34 = vsel %vm1839_vm1, %v1814_v58, %v1810_v44  ;;  %v1834_v22 = vrot.slane %v1517_v27, %v3725_v40  ;;  %v1838_v54 = vrot.slane %v1518_v12, %v3725_v40  ;;  %v3735_v26 = vmov 0.0  }
  0xcf   : > { %v1896_v2 = vsel %vm1841_vm2, %v1818_v13, %v1895_v34  ;;  %2563 = vmatprep.mubr.msk.bf16.mxu0 %vm2798_vm10, %v3735_v26  ;;  %vm2224_vm13 = vcmask 97280   ;;  %vm2233_vm14 = vcmask 130048   ;;  %vm2242_vm15 = vcmask 162816  }
  0xd0   : > { %v1897_v39 = vsel %vm1843_vm3, %v1822_v4, %v1896_v2  ;;  %vm2260_vm1 = vcmask 228352   ;;  %vm2269_vm2 = vcmask 261120   ;;  %vm2283_vm3 = vcmask 293888  }
  0xd1   : > { %v1898_v49 = vsel %vm1845_vm4, %v1826_v48, %v1897_v39  ;;  %vm2339_vm4 = vcmask 523264  }
  0xd2   : > { %v1899_v38 = vsel %vm1847_vm5, %v1830_v50, %v1898_v49 }
  0xd3   : > { %v1900_v41 = vsel %vm1849_vm6, %v1834_v22, %v1899_v38 }
  0xd4   : > { %v1901_v14 = vsel %vm1851_vm7, %v1838_v54, %v1900_v41 }
  0xd5   : > { %v1911_v63 = vrot.slane %v1901_v14, 7 }
  0xd7   : > { %v1930_v16 = vsel %vm1921_vm0, 0.0, %v1911_v63  ;;  %v1939_v17 = vsel %vm1921_vm0, %v1911_v63, 0.0  ;;  %vm2251_vm0 = vcmask 195584  }
  0xd8   : > { %v2716_v1 = vpack.i.bf16 %v1930_v16, %v3477_v30  ;;  %v2008_v62 = vrot.slane %v1930_v16, 1  ;;  %v2009_v36 = vrot.slane %v1939_v17, 1  ;;  %v2011_v40 = vrot.slane %v1930_v16, 2 }
  0xd9   : > { %v2012_v55 = vrot.slane %v1939_v17, 2  ;;  %v2731_v52 = vpack.i.bf16 %v3726_v19, %v1930_v16 }
  0xda   : > { %2717 = vrot.lane.b32.xlu0 %v2716_v1, %s2790_s15  ;;  %v2010_v42 = vsel %vm1956_vm8, %v2008_v62, %v2009_v36 }
  0xdb   : > { %v2721_v0 = vpack.i.bf16 %v2010_v42, %v3486_v32  ;;  %v2013_v10 = vsel %vm1981_vm9, %v2011_v40, %v2012_v55  ;;  %v2736_v23 = vpack.i.bf16 %v3240_v47, %v2010_v42  ;;  %v3531_v32 = vpop.permute.xlu0 %2597 }
  0xdc   : > { %v2726_v61 = vpack.i.bf16 %v2013_v10, %v3491_v20  ;;  %v2741_v21 = vpack.i.bf16 %v3307_v24, %v2013_v10  ;;  %v2600_v10 = vunpack.i.h.bf16 %v3531_v32 }
  0xdd   : > { %2722 = vrot.lane.b32.xlu1 %v2721_v0, %s2796_s21 }
  0xde   : > { %2727 = vrot.lane.b32.xlu0 %v2726_v61, %s2794_s19  ;;  %v2599_v61 = vunpack.i.l.bf16 %v3531_v32 }
  0xe1   : > { %2732 = vrot.lane.b32.xlu1 %v2731_v52, %s2792_s17 }
  0xe2   : > { %2737 = vrot.lane.b32.xlu0 %v2736_v23, %s2795_s20  ;;  %v2588_v59 = vpop.permute.xlu1 %2587 }
  0xe3   : > { %v2590_v43 = vunpack.i.h.bf16 %v2588_v59  ;;  %v2589_v8 = vunpack.i.l.bf16 %v2588_v59 }
  0xe5   : > { %2742 = vrot.lane.b32.xlu1 %v2741_v21, %s2797_s22  ;;  %v2608_v20 = vpop.permute.xlu0 %2607 }
  0xe6   : > { %v2593_v5 = vpop.permute.xlu1 %2592  ;;  %v2610_v33 = vunpack.i.h.bf16 %v2608_v20  ;;  %v2609_v47 = vunpack.i.l.bf16 %v2608_v20 }
  0xe7   : > { %v2595_v58 = vunpack.i.h.bf16 %v2593_v5  ;;  %v2594_v13 = vunpack.i.l.bf16 %v2593_v5 }
  0xe8   : > { %v2208_v37 = vsel %vm2206_vm11, %v3260_v57, %v2610_v33  ;;  %v2207_v60 = vsel %vm2206_vm11, %v3726_v19, %v2609_v47 }
  0xf6   : > { %v2613_v11 = vpop.permute.xlu0 %2612 }
  0xf7   : > { %v2615_v31 = vunpack.i.h.bf16 %v2613_v11  ;;  %v2614_v45 = vunpack.i.l.bf16 %v2613_v11 }
  0xf9   : > { %v2216_v53 = vsel %vm2215_vm12, %v2207_v60, %v2614_v45  ;;  %v2217_v6 = vsel %vm2215_vm12, %v2208_v37, %v2615_v31 }
  0xfa   : > { %v2623_v3 = vpop.permute.xlu0 %2622  ;;  %v2225_v19 = vsel %vm2224_vm13, %v2216_v53, %v2589_v8  ;;  %v2226_v57 = vsel %vm2224_vm13, %v2217_v6, %v2590_v43 }
  0xfb   : > { %v2625_v15 = vunpack.i.h.bf16 %v2623_v3  ;;  %v2624_v18 = vunpack.i.l.bf16 %v2623_v3 }
  0xfc   : > { %v3533_v7 = vpop.permute.xlu1 %2602 }
  0xfd   : > { %v2605_v31 = vunpack.i.h.bf16 %v3533_v7  ;;  %v2604_v45 = vunpack.i.l.bf16 %v3533_v7 }
  0xfe   : > { %v2628_v24 = vpop.permute.xlu0 %2627 }
  0xff   : > { %v2630_v12 = vunpack.i.h.bf16 %v2628_v24  ;;  %v2629_v44 = vunpack.i.l.bf16 %v2628_v24 }
 0x100   : > { %v2618_v9 = vpop.permute.xlu1 %2617 }
 0x101   : > { %v2620_v35 = vunpack.i.h.bf16 %v2618_v9  ;;  %v2619_v56 = vunpack.i.l.bf16 %v2618_v9 }
 0x102   : > { %v2638_v27 = vpop.permute.xlu0 %2637 }
 0x103   : > { %v2234_v4 = vsel %vm2233_vm14, %v2225_v19, %v2619_v56  ;;  %v2235_v48 = vsel %vm2233_vm14, %v2226_v57, %v2620_v35  ;;  %v2640_v2 = vunpack.i.h.bf16 %v2638_v27  ;;  %v2639_v54 = vunpack.i.l.bf16 %v2638_v27 }
 0x104   : > { %v2243_v50 = vsel %vm2242_vm15, %v2234_v4, %v2624_v18  ;;  %v2244_v34 = vsel %vm2242_vm15, %v2235_v48, %v2625_v15  ;;  %v2633_v22 = vpop.permute.xlu1 %2632 }
 0x105   : > { %v2635_v39 = vunpack.i.h.bf16 %v2633_v22  ;;  %v2634_v49 = vunpack.i.l.bf16 %v2633_v22  ;;  %v2252_v41 = vsel %vm2251_vm0, %v2243_v50, %v2594_v13  ;;  %v2253_v14 = vsel %vm2251_vm0, %v2244_v34, %v2595_v58 }
 0x106   : > { %v2653_v38 = vpop.permute.xlu0 %2652  ;;  %v2261_v63 = vsel %vm2260_vm1, %v2252_v41, %v2629_v44  ;;  %v2262_v16 = vsel %vm2260_vm1, %v2253_v14, %v2630_v12  ;;  %v2210_v36 = vsel %vm2206_vm11, %v3729_v29, %v2640_v2  ;;  %v2209_v40 = vsel %vm2206_vm11, %v3269_v51, %v2639_v54 }
 0x107   : > { %v2270_v17 = vsel %vm2269_vm2, %v2261_v63, %v2634_v49  ;;  %v2271_v1 = vsel %vm2269_vm2, %v2262_v16, %v2635_v39  ;;  %v2655_v11 = vunpack.i.h.bf16 %v2653_v38  ;;  %v2654_v5 = vunpack.i.l.bf16 %v2653_v38 }
 0x108   : > { %v2643_v62 = vpop.permute.xlu1 %2642  ;;  %v2279_v55 = vpack.c.bf16 %v2271_v1, %v2270_v17 }
 0x109   : > { %v2645_v42 = vunpack.i.h.bf16 %v2643_v62  ;;  %v2644_v0 = vunpack.i.l.bf16 %v2643_v62 }
 0x10a   : > { %v2288_v52 = vsel %vm2283_vm3, %v2279_v55, 0  ;;  %v2658_v20 = vpop.permute.xlu0 %2657 }
 0x10b   : > { %v2219_v23 = vsel %vm2215_vm12, %v2210_v36, %v2645_v42  ;;  %v2218_v21 = vsel %vm2215_vm12, %v2209_v40, %v2644_v0  ;;  %2556 = vmatpush3.bf16.xpose.msra.mxu0 %v2288_v52  ;;  %v2660_v32 = vunpack.i.h.bf16 %v2658_v20  ;;  %v2659_v47 = vunpack.i.l.bf16 %v2658_v20 }
 0x10c   : > { %v2648_v59 = vpop.permute.xlu1 %2647  ;;  %v2227_v29 = vsel %vm2224_vm13, %v2218_v21, %v2599_v61  ;;  %v2228_v51 = vsel %vm2224_vm13, %v2219_v23, %v2600_v10  ;;  %2557 = vmatprep.subr.bf16.mxu0 %v3735_v26 }
 0x10d   : > { %v2650_v3 = vunpack.i.h.bf16 %v2648_v59  ;;  %v2649_v33 = vunpack.i.l.bf16 %v2648_v59 }
 0x10e   : > { %v2668_v57 = vpop.permute.xlu0 %2667 }
 0x10f   : > { %v2236_v24 = vsel %vm2233_vm14, %v2227_v29, %v2649_v33  ;;  %v2237_v37 = vsel %vm2233_vm14, %v2228_v51, %v2650_v3  ;;  %v2670_v58 = vunpack.i.h.bf16 %v2668_v57  ;;  %v2669_v13 = vunpack.i.l.bf16 %v2668_v57 }
 0x110   : > { %v2245_v60 = vsel %vm2242_vm15, %v2236_v24, %v2654_v5  ;;  %v2246_v53 = vsel %vm2242_vm15, %v2237_v37, %v2655_v11  ;;  %v2663_v6 = vpop.permute.xlu1 %2662 }
 0x111   : > { %v2254_v43 = vsel %vm2251_vm0, %v2245_v60, %v2604_v45  ;;  %v2255_v8 = vsel %vm2251_vm0, %v2246_v53, %v2605_v31  ;;  %v2665_v9 = vunpack.i.h.bf16 %v2663_v6  ;;  %v2664_v15 = vunpack.i.l.bf16 %v2663_v6 }
 0x112   : > { %v2263_v18 = vsel %vm2260_vm1, %v2254_v43, %v2659_v47  ;;  %v2264_v35 = vsel %vm2260_vm1, %v2255_v8, %v2660_v32  ;;  %v2212_v50 = vsel %vm2206_vm11, %v3339_v28, %v2670_v58  ;;  %v2211_v34 = vsel %vm2206_vm11, %v3734_v25, %v2669_v13 }
 0x113   : > { %v2272_v7 = vsel %vm2269_vm2, %v2263_v18, %v2664_v15  ;;  %v2273_v56 = vsel %vm2269_vm2, %v2264_v35, %v2665_v9 }
 0x114   : > { %v2280_v27 = vpack.c.bf16 %v2273_v56, %v2272_v7  ;;  %v2678_v12 = vpop.permute.xlu1 %2677 }
 0x115   : > { %v2680_v4 = vunpack.i.h.bf16 %v2678_v12  ;;  %v2679_v48 = vunpack.i.l.bf16 %v2678_v12 }
 0x116   : > { %v2291_v19 = vsel %vm2283_vm3, %v2280_v27, 0 }
 0x117   : > { %2558 = vmatpush3.bf16.xpose.msra.mxu0 %v2291_v19  ;;  %v2220_v49 = vsel %vm2215_vm12, %v2211_v34, %v2679_v48  ;;  %v2221_v38 = vsel %vm2215_vm12, %v2212_v50, %v2680_v4 }
 0x118   : > { %2559 = vmatprep.subr.bf16.mxu0 %v3735_v26 }
 0x11d   : > { %v2673_v44 = vpop.permute.xlu0 %2672 }
 0x11e   : > { %v2675_v22 = vunpack.i.h.bf16 %v2673_v44  ;;  %v2674_v2 = vunpack.i.l.bf16 %v2673_v44 }
 0x120   : > { %v2683_v54 = vpop.permute.xlu1 %2682  ;;  %v2229_v63 = vsel %vm2224_vm13, %v2220_v49, %v2674_v2  ;;  %v2230_v16 = vsel %vm2224_vm13, %v2221_v38, %v2675_v22 }
 0x121   : > { %v2688_v39 = vpop.permute.xlu0 %2687  ;;  %v2685_v41 = vunpack.i.h.bf16 %v2683_v54  ;;  %v2684_v14 = vunpack.i.l.bf16 %v2683_v54 }
 0x122   : > { %v2690_v17 = vunpack.i.h.bf16 %v2688_v39  ;;  %v2689_v1 = vunpack.i.l.bf16 %v2688_v39 }
 0x123   : > { %v2238_v62 = vsel %vm2233_vm14, %v2229_v63, %v2684_v14  ;;  %v2239_v25 = vsel %vm2233_vm14, %v2230_v16, %v2685_v41 }
 0x124   : > { %v2247_v55 = vsel %vm2242_vm15, %v2238_v62, %v2689_v1  ;;  %v2248_v42 = vsel %vm2242_vm15, %v2239_v25, %v2690_v17  ;;  %v2278_v1 = vld [vmem:[%s3633_s1] sm:$0xf] }
 0x134   : > { %v2693_v28 = vpop.permute.xlu1 %2692 }
 0x135   : > { %v2695_v36 = vunpack.i.h.bf16 %v2693_v28  ;;  %v2694_v40 = vunpack.i.l.bf16 %v2693_v28 }
 0x137   : > { %v2256_v23 = vsel %vm2251_vm0, %v2247_v55, %v2694_v40  ;;  %v2257_v21 = vsel %vm2251_vm0, %v2248_v42, %v2695_v36 }
 0x138   : > { %v2698_v0 = vpop.permute.xlu0 %2697  ;;  %v2703_v52 = vpop.permute.xlu1 %2702 }
 0x139   : > { %v2700_v10 = vunpack.i.h.bf16 %v2698_v0  ;;  %v2699_v61 = vunpack.i.l.bf16 %v2698_v0  ;;  %v2705_v20 = vunpack.i.h.bf16 %v2703_v52  ;;  %v2704_v59 = vunpack.i.l.bf16 %v2703_v52 }
 0x13b   : > { %v2265_v29 = vsel %vm2260_vm1, %v2256_v23, %v2699_v61  ;;  %v2266_v51 = vsel %vm2260_vm1, %v2257_v21, %v2700_v10 }
 0x13c   : > { %v2274_v11 = vsel %vm2269_vm2, %v2265_v29, %v2704_v59  ;;  %v2275_v5 = vsel %vm2269_vm2, %v2266_v51, %v2705_v20  ;;  %v2708_v32 = vpop.permute.xlu0 %2707  ;;  %v2713_v45 = vpop.permute.xlu1 %2712 }
 0x13d   : > { %v2281_v3 = vpack.c.bf16 %v2275_v5, %v2274_v11  ;;  %v2710_v47 = vunpack.i.h.bf16 %v2708_v32  ;;  %v2709_v31 = vunpack.i.l.bf16 %v2708_v32  ;;  %v2715_v24 = vunpack.i.h.bf16 %v2713_v45 }
 0x13e   : > { %v2714_v37 = vunpack.i.l.bf16 %v2713_v45 }
 0x13f   : > { %v2294_v33 = vsel %vm2283_vm3, %v2281_v3, 0  ;;  %v2214_v60 = vsel %vm2206_vm11, %v3477_v30, %v2710_v47  ;;  %v2213_v53 = vsel %vm2206_vm11, %v3429_v46, %v2709_v31 }
 0x140   : > { %2560 = vmatpush3.bf16.xpose.msra.mxu0 %v2294_v33  ;;  %v2222_v9 = vsel %vm2215_vm12, %v2213_v53, %v2714_v37  ;;  %v2223_v15 = vsel %vm2215_vm12, %v2214_v60, %v2715_v24 }
 0x141   : > { %2561 = vmatprep.subr.bf16.mxu0 %v3735_v26 }
 0x14c   : > { %v2718_v6 = vpop.permute.xlu0 %2717 }
 0x14d   : > { %v2720_v43 = vunpack.i.h.bf16 %v2718_v6  ;;  %v2719_v8 = vunpack.i.l.bf16 %v2718_v6 }
 0x14f   : > { %v2231_v26 = vsel %vm2224_vm13, %v2222_v9, %v2719_v8  ;;  %v2232_v18 = vsel %vm2224_vm13, %v2223_v15, %v2720_v43  ;;  %v2723_v35 = vpop.permute.xlu1 %2722 }
 0x150   : > { %v2725_v7 = vunpack.i.h.bf16 %v2723_v35  ;;  %v2724_v56 = vunpack.i.l.bf16 %v2723_v35  ;;  %v2728_v27 = vpop.permute.xlu0 %2727 }
 0x151   : > { %v2730_v19 = vunpack.i.h.bf16 %v2728_v27  ;;  %v2729_v30 = vunpack.i.l.bf16 %v2728_v27 }
 0x152   : > { %v2240_v57 = vsel %vm2233_vm14, %v2231_v26, %v2724_v56  ;;  %v2241_v46 = vsel %vm2233_vm14, %v2232_v18, %v2725_v7 }
 0x153   : > { %v2249_v12 = vsel %vm2242_vm15, %v2240_v57, %v2729_v30  ;;  %v2250_v44 = vsel %vm2242_vm15, %v2241_v46, %v2730_v19  ;;  %v2733_v58 = vpop.permute.xlu1 %2732 }
 0x154   : > { %v2735_v13 = vunpack.i.h.bf16 %v2733_v58  ;;  %v2734_v4 = vunpack.i.l.bf16 %v2733_v58  ;;  %v2738_v48 = vpop.permute.xlu0 %2737 }
 0x155   : > { %v2740_v50 = vunpack.i.h.bf16 %v2738_v48  ;;  %v2739_v34 = vunpack.i.l.bf16 %v2738_v48 }
 0x156   : > { %v2258_v22 = vsel %vm2251_vm0, %v2249_v12, %v2734_v4  ;;  %v2259_v2 = vsel %vm2251_vm0, %v2250_v44, %v2735_v13 }
 0x157   : > { %v2267_v54 = vsel %vm2260_vm1, %v2258_v22, %v2739_v34  ;;  %v2268_v39 = vsel %vm2260_vm1, %v2259_v2, %v2740_v50  ;;  %v2743_v49 = vpop.permute.xlu1 %2742 }
 0x158   : > { %v2745_v38 = vunpack.i.h.bf16 %v2743_v49  ;;  %v2744_v41 = vunpack.i.l.bf16 %v2743_v49 }
 0x15a   : > { %v2276_v14 = vsel %vm2269_vm2, %v2267_v54, %v2744_v41  ;;  %v2277_v63 = vsel %vm2269_vm2, %v2268_v39, %v2745_v38 }
 0x15b   : > { %v2282_v16 = vpack.c.bf16 %v2277_v63, %v2276_v14 }
 0x15d   : > { %v2297_v17 = vsel %vm2283_vm3, %v2282_v16, 0 }
 0x15e   : > { %2562 = vmatpush3.bf16.xpose.msra.mxu0 %v2297_v17 }
 0x165   : > { %2564 = vmatmul.mubr.msk.bf16.vlgmr.msra.gmra.mrb[0].mxu0 %vm2283_vm3, %v2278_v1 }
 0x238   : > { %v2333_v28 = vpop.f32.mrb[0].mxu0 }
 0x239   : > { %v2565_v62 = vpop.f32.mrb[1].mxu0  ;;  %v2340_v25 = vsel %vm2339_vm4, %v2333_v28, 0.0 }
 0x23a   : > { %2341 = vadd.xlane.f32.xlu0 %v2340_v25  ;;  %v2336_v36 = vpop.f32.mrb[2].mxu0 }
 0x23b   : > { %v2566_v40 = vpop.f32.mrb[3].mxu0 }
 0x2c7   : > { %v2342_v55 = vpop.xlane.xlu0 %2341 }
 0x2c8   : > { %v2343_v42 = vmul.f32 0.015625, %v2342_v55 }
 0x2ca   : > { %v2344_v0 = vsub.f32 %v2333_v28, %v2343_v42 }
 0x2cc   : > { %v2345_v10 = vmul.f32 %v2344_v0, %v2344_v0 }
 0x2ce   : > { %v2346_v61 = vsel %vm2339_vm4, %v2345_v10, 0.0 }
 0x2cf   : > { %2347 = vadd.xlane.f32.xlu1 %v2346_v61 }
 0x35c   : > { %v2348_v52 = vpop.xlane.xlu1 %2347 }
 0x35d   : > { %v2349_v23 = vmul.f32 0.015625, %v2348_v52 }
 0x35f   : > { %v2350_v21 = vadd.f32 1e-05, %v2349_v23 }
 0x361   : > { %2778 = vrsqrt.f32 %v2350_v21 }
 0x36b   : > { %v2779_v20 = vpop.eup %2778 }
 0x36c   : > { %v2352_v59 = vmul.f32 %v2779_v20, %v2344_v0 }
 0x36e   : > { %vm2353_vm5 = vcmp.gt.f32.partialorder %v2352_v59, 0.0  ;;  %v2354_v29 = vmul.f32 0.2, %v2352_v59 }
 0x370   : > { %v2355_v51 = vsel %vm2353_vm5, %v2352_v59, %v2354_v29 }
 0x371   : > { %2356 = vst.msk [vmem:[%s141_s28] sm:$0xff] %vm2339_vm4, %v2355_v51 }
 0x372 PF: > { %s12_s9 = sadd.s32 1, %s2786_s9  }
 0x373   : > { %p9_p4 = scmp.ge.s32.totalorder %s12_s9, 4  }
 0x375   :  { %11 = sbr.rel (!%p9_p4) target bundleno = 1 (0x1), region = 58 }

</bundles_post_ra>
